<compile_context>
chip_gen: v7x
topology: tpu7x:2x2x1
jax: 0.10.0
libtpu: 0.0.40
codegen_flags: <defaults>
</compile_context>

<pallas_src>
import functools

import jax
import jax.numpy as jnp
from jax.experimental import pallas as pl
from jax.experimental.pallas import tpu as pltpu


# ----------------------------------------------------------------------------- helpers

def _round_up(x, m):
    return ((x + m - 1) // m) * m


def _mm(a, b):
    """2-D matmul with f32 accumulation (MXU)."""
    return jax.lax.dot_general(
        a, b, (((1,), (0,)), ((), ())), preferred_element_type=jnp.float32)


def _shifted(x, off):
    """S with S[:, q] = x[:, q + off], zero-filled outside range (off in [-2, 1])."""
    if off == 0:
        return x
    C, L = x.shape
    if off < 0:
        n = -off
        return jnp.concatenate([jnp.zeros((C, n), x.dtype), x[:, :L - n]], axis=1)
    n = off
    return jnp.concatenate([x[:, n:], jnp.zeros((C, n), x.dtype)], axis=1)


def _run_conv_layers(h, w_refs, b_refs, offsets, mask):
    """1x3 conv stack on the flat padded layout.

    h:       (Cin, L) activations, pad columns zero.
    w_refs:  per layer (Cout, 3*Cin) flattened correlation weights.
    b_refs:  per layer (Cout, 1) biases.
    offsets: the three tap offsets ((-1,0,1) for 'same', (-2,-1,0) for conv-transpose).
    mask:    (1, L) f32, 1 at data columns, 0 at pad/tail columns.
    ReLU + re-mask on every layer but the last.
    """
    n = len(w_refs)
    for i in range(n):
        W = w_refs[i][...]
        b = b_refs[i][...]
        stacked = jnp.concatenate([_shifted(h, off) for off in offsets], axis=0)
        y = _mm(W, stacked) + b                   # single MXU push, K = 3*Cin
        if i < n - 1:
            y = jnp.maximum(y, 0.0) * mask        # keep pad columns exactly zero
        h = y
    return h


# ----------------------------------------------------------------------------- kernels

def _convstack_kernel(*refs, n_layers, offsets):
    """Fused conv stack (encoder or merged decoder; proj folded into last layer).

    refs = (x, mask, w_0..w_{n-1}, b_0..b_{n-1}, out); x/mask/out: (1, L) flat layout.
    """
    x_ref, mask_ref = refs[0], refs[1]
    w_refs = refs[2:2 + n_layers]
    b_refs = refs[2 + n_layers:2 + 2 * n_layers]
    o_ref = refs[-1]
    h = _run_conv_layers(x_ref[...], w_refs, b_refs, offsets, mask_ref[...])
    o_ref[...] = h            # pad columns carry junk; the wrapper slices them away


def _classifier_kernel(*refs, n_layers):
    """Fused classifier: conv stack + masked time-mean (MXU) + dense head.

    refs = (z, mask, mean_mat, w_0..w_{n-1}, b_0..b_{n-1}, w_head, b_head, out).
    z: (N, L) flat padded; mean_mat: (L, B); out: (num_classes, B).
    """
    z_ref, mask_ref, mean_ref = refs[0], refs[1], refs[2]
    w_refs = refs[3:3 + n_layers]
    b_refs = refs[3 + n_layers:3 + 2 * n_layers]
    wh_ref = refs[3 + 2 * n_layers]
    bh_ref = refs[4 + 2 * n_layers]
    o_ref = refs[-1]

    h = _run_conv_layers(z_ref[...], w_refs, b_refs, (-1, 0, 1), mask_ref[...])
    m = _mm(h, mean_ref[...])                     # masked time-mean, no relayouts
    o_ref[...] = _mm(wh_ref[...], m) + bh_ref[...]


def _koopman_kernel(kt_ref, zf_ref, zl_ref, olb_ref, ola_ref, *, lb_iters, la_iters):
    """Both Koopman rollouts for one batch element, sharing the loaded K^T.

    kt_ref: (1, N, N) = K^T; zf/zl: (1, 1, N) row states;
    outputs (1, lb_iters, N) / (1, la_iters, N) -> full-lane rows at static sublane
    offsets (no dynamic-lane stores).
    """
    KT = kt_ref[0]                                # (N, N)

    def rollout(row0, out_ref, iters):
        row = row0                                # (1, N)
        for i in range(iters):                    # static unroll (tiny trip count)
            row = _mm(row, KT)                    # z_{t+1}^T = z_t^T @ K^T
            out_ref[0, i:i + 1, :] = row
    rollout(zf_ref[0], olb_ref, lb_iters)
    rollout(zl_ref[0], ola_ref, la_iters)


# ----------------------------------------------------------------------------- wrappers

def encode(params, x_bnT):
    B, N, T = x_bnT.shape
    M, Tp = B * N, T + 2
    L = M * Tp
    Lp = _round_up(L, 128)                        # lane-dense, unmasked final store
    xf = jnp.pad(x_bnT.reshape(M, T), ((0, 0), (1, 1))).reshape(1, L)
    xf = jnp.pad(xf, ((0, 0), (0, Lp - L)))
    mask = jnp.pad(jnp.ones((M, T), jnp.float32), ((0, 0), (1, 1))).reshape(1, L)
    mask = jnp.pad(mask, ((0, 0), (0, Lp - L)))
    ws, bs = params["enc_w"], params["enc_b"]
    kern = functools.partial(_convstack_kernel, n_layers=len(ws), offsets=(-1, 0, 1))
    out = pl.pallas_call(
        kern, out_shape=jax.ShapeDtypeStruct((1, Lp), jnp.float32))(xf, mask, *ws, *bs)
    return out[0, :L].reshape(M, Tp)[:, 1:T + 1].reshape(B, N, T)


def decode_many(params, zs):
    """Merged decode of several (B, N, Ti) latents in ONE pallas_call.

    ConvTranspose2d(1x3) + crop-to-first-T == correlation with reversed taps on a
    left-by-2 zero-padded input (offsets (-2,-1,0)); rows are independent, so all
    inputs are concatenated along the flat lane axis.
    """
    parts, masks, metas = [], [], []
    for z in zs:
        B, N, Ti = z.shape
        M, Tpi = B * N, Ti + 2
        parts.append(jnp.pad(z.reshape(M, Ti), ((0, 0), (2, 0))).reshape(1, M * Tpi))
        masks.append(
            jnp.pad(jnp.ones((M, Ti), jnp.float32), ((0, 0), (2, 0))).reshape(1, M * Tpi))
        metas.append((B, N, Ti, M, Tpi))
    flat = jnp.concatenate(parts, axis=1)
    mask = jnp.concatenate(masks, axis=1)
    L = flat.shape[1]
    Lp = _round_up(L, 128)
    flat = jnp.pad(flat, ((0, 0), (0, Lp - L)))
    mask = jnp.pad(mask, ((0, 0), (0, Lp - L)))
    ws, bs = params["dec_w"], params["dec_b"]
    kern = functools.partial(_convstack_kernel, n_layers=len(ws), offsets=(-2, -1, 0))
    out = pl.pallas_call(
        kern, out_shape=jax.ShapeDtypeStruct((1, Lp), jnp.float32))(flat, mask, *ws, *bs)
    results, off = [], 0
    for (B, N, Ti, M, Tpi) in metas:
        results.append(out[0, off:off + M * Tpi].reshape(M, Tpi)[:, 2:].reshape(B, N, Ti))
        off += M * Tpi
    return results


def classify(params, z):
    B, N, T = z.shape
    Tp = T + 2
    L = B * Tp
    Lp = _round_up(L, 128)
    zf = jnp.pad(z, ((0, 0), (0, 0), (1, 1))).transpose(1, 0, 2).reshape(N, L)
    zf = jnp.pad(zf, ((0, 0), (0, Lp - L)))
    mask = jnp.pad(jnp.ones((B, T), jnp.float32), ((0, 0), (1, 1))).reshape(1, L)
    mask = jnp.pad(mask, ((0, 0), (0, Lp - L)))
    # Constant masked-mean matrix (built once by XLA, const-folded under jit).
    col = jnp.arange(Lp)
    rel = col % Tp
    data = (rel >= 1) & (rel <= T) & (col < L)
    bidx = col // Tp
    mean_mat = jnp.where(
        data[:, None] & (bidx[:, None] == jnp.arange(B)[None, :]),
        jnp.float32(1.0 / T), jnp.float32(0.0)).astype(jnp.float32)
    ws, bs = params["cls_w"], params["cls_b"]
    wh, bh = params["cls_head_w"], params["cls_head_b"]
    kern = functools.partial(_classifier_kernel, n_layers=len(ws))
    scores_cb = pl.pallas_call(
        kern, out_shape=jax.ShapeDtypeStruct((wh.shape[0], B), jnp.float32))(
            zf, mask, mean_mat, *ws, *bs, wh, bh)
    return scores_cb.T                            # (B, num_classes)


def koopman_predict(K, z_first_row, z_last_row, lb_iters, la_iters):
    B, N, _ = K.shape
    KT = jnp.transpose(K, (0, 2, 1))              # tiny XLA transpose, loaded once/batch
    kern = functools.partial(_koopman_kernel, lb_iters=lb_iters, la_iters=la_iters)
    out_lb, out_la = pl.pallas_call(
        kern,
        grid=(B,),
        in_specs=[
            pl.BlockSpec((1, N, N), lambda b: (b, 0, 0)),
            pl.BlockSpec((1, 1, N), lambda b: (b, 0, 0)),
            pl.BlockSpec((1, 1, N), lambda b: (b, 0, 0)),
        ],
        out_specs=(
            pl.BlockSpec((1, lb_iters, N), lambda b: (b, 0, 0)),
            pl.BlockSpec((1, la_iters, N), lambda b: (b, 0, 0)),
        ),
        out_shape=(
            jax.ShapeDtypeStruct((B, lb_iters, N), jnp.float32),
            jax.ShapeDtypeStruct((B, la_iters, N), jnp.float32),
        ),
        compiler_params=pltpu.CompilerParams(dimension_semantics=("parallel",)),
    )(KT, z_first_row, z_last_row)
    return jnp.transpose(out_lb, (0, 2, 1)), jnp.transpose(out_la, (0, 2, 1))


# ----------------------------------------------------------------------------- params

def init_params(key, *, backbone_layers, hidden, cls_layers, cls_hidden,
                num_nodes, num_classes):
    keys = iter(jax.random.split(key, 64))

    def _normal(shape, scale):
        return jax.random.normal(next(keys), shape, jnp.float32) * scale

    # raw PyTorch-layout weights -------------------------------------------------
    enc_raw = []
    for l in range(backbone_layers):
        cin = 1 if l == 0 else hidden
        enc_raw.append((_normal((hidden, cin, 1, 3), 0.1), _normal((hidden,), 0.01)))
    proj_w, proj_b = _normal((1, hidden), 0.1), _normal((1,), 0.01)

    dec_raw = []
    for l in range(backbone_layers):
        cin = 1 if l == 0 else hidden
        dec_raw.append((_normal((cin, hidden, 1, 3), 0.1), _normal((hidden,), 0.01)))
    projt_w, projt_b = _normal((1, hidden), 0.1), _normal((1,), 0.01)

    cls_raw = []
    for l in range(cls_layers):
        cin = num_nodes if l == 0 else cls_hidden
        cls_raw.append((_normal((cls_hidden, cin, 1, 3), 0.1), _normal((cls_hidden,), 0.01)))
    head_w, head_b = _normal((num_classes, cls_hidden), 0.1), _normal((num_classes,), 0.01)

    # xavier_normal for attention (num_classes, N, N)
    std = (2.0 / (num_nodes * num_nodes + num_classes * num_nodes)) ** 0.5
    attention = _normal((num_classes, num_nodes, num_nodes), std)

    # flatten to (Cout, 3*Cin) correlation form; fold proj into the last conv -----
    def flat_conv(w_pt):       # Conv2d weight (cout, cin, 1, 3), taps at offsets -1,0,1
        cout = w_pt.shape[0]
        return jnp.transpose(w_pt[:, :, 0, :], (0, 2, 1)).reshape(cout, -1)

    def flat_convt(w_pt):      # ConvTranspose2d weight (cin, cout, 1, 3), taps reversed
        cout = w_pt.shape[1]
        return jnp.transpose(w_pt[:, :, 0, ::-1], (1, 2, 0)).reshape(cout, -1)

    enc_w = [flat_conv(w) for w, _ in enc_raw]
    enc_b = [b.reshape(-1, 1) for _, b in enc_raw]
    enc_w[-1] = proj_w @ enc_w[-1]                            # (1, 3*Cin)
    enc_b[-1] = proj_w @ enc_b[-1] + proj_b.reshape(1, 1)     # (1, 1)

    dec_w = [flat_convt(w) for w, _ in dec_raw]
    dec_b = [b.reshape(-1, 1) for _, b in dec_raw]
    dec_w[-1] = projt_w @ dec_w[-1]
    dec_b[-1] = projt_w @ dec_b[-1] + projt_b.reshape(1, 1)

    cls_w = [flat_conv(w) for w, _ in cls_raw]
    cls_b = [b.reshape(-1, 1) for _, b in cls_raw]

    return {
        "enc_w": enc_w, "enc_b": enc_b,
        "dec_w": dec_w, "dec_b": dec_b,
        "cls_w": cls_w, "cls_b": cls_b,
        "cls_head_w": head_w, "cls_head_b": head_b.reshape(-1, 1),
        "attention": attention,
    }


# ----------------------------------------------------------------------------- model

def mse(a, b):
    return jnp.mean((a - b) ** 2)


def forward(params, x, y, labels):
    # x: (B, T, N), y: (B, Ty, N), labels: (B, 1) int
    B, T, N = x.shape
    Ty = y.shape[1]
    x_t = jnp.transpose(x, (0, 2, 1))              # (B, N, T)
    y_t = jnp.transpose(y, (0, 2, 1))              # (B, N, Ty)

    z = encode(params, x_t)                        # (B, N, T)
    cls_scores = classify(params, z)               # (B, num_classes)
    cls_prob = jax.nn.softmax(cls_scores, axis=-1)

    # tiny (B,C) x (C,N,N) contraction: plain XLA is cheaper than a kernel launch
    K = jnp.einsum('bc,cxy->bxy', cls_prob, params["attention"])   # (B, N, N)

    lookback_pred, lookahead_pred = koopman_predict(
        K, z[:, :, 0][:, None, :], z[:, :, -1][:, None, :], T - 1, Ty)

    # all three decodes share one fused kernel launch
    x_recon, lookback_recon, lookahead_recon = decode_many(
        params, [z, lookback_pred, lookahead_pred])

    recon_loss = mse(x_recon, x_t)
    lookback_loss = mse(lookback_recon, x_t[:, :, 1:])
    lookahead_loss = mse(lookahead_recon, y_t)
    latent_loss = mse(lookback_pred, z[:, :, 1:])

    lab = labels[:, 0]
    logp = jax.nn.log_softmax(cls_scores, axis=-1)
    cls_loss = -jnp.mean(jnp.take_along_axis(logp, lab[:, None], axis=1)[:, 0])

    return {
        "recon": x_recon,
        "lookback": lookback_recon,
        "lookahead": lookahead_recon,
        "cls_scores": cls_scores,
        "loss": {
            "recon": recon_loss,
            "lookback": lookback_loss,
            "lookahead": lookahead_loss,
            "latent": latent_loss,
            "cls": cls_loss,
        },
    }


# ----------------------------------------------------------------------------- main

if __name__ == "__main__":
    B, T, Ty, N = 2, 8, 4, 16
    BACKBONE_LAYERS, HIDDEN = 2, 8
    CLS_LAYERS, CLS_HIDDEN = 2, 16
    NUM_CLASSES = 5

    key = jax.random.PRNGKey(0)
    kp, kx, ky, kl = jax.random.split(key, 4)

    params = init_params(
        kp, backbone_layers=BACKBONE_LAYERS, hidden=HIDDEN,
        cls_layers=CLS_LAYERS, cls_hidden=CLS_HIDDEN,
        num_nodes=N, num_classes=NUM_CLASSES)

    x = jax.random.normal(kx, (B, T, N), jnp.float32)
    y = jax.random.normal(ky, (B, Ty, N), jnp.float32)
    labels = jax.random.randint(kl, (B, 1), 0, NUM_CLASSES, jnp.int32)

    out = jax.jit(forward)(params, x, y, labels)
    out = jax.tree_util.tree_map(jax.block_until_ready, out)

    assert out["recon"].shape == (B, N, T)
    assert out["lookback"].shape == (B, N, T - 1)
    assert out["lookahead"].shape == (B, N, Ty)
    assert out["cls_scores"].shape == (B, NUM_CLASSES)
    print("KERNEL_OK")
</pallas_src>

<mosaic_0001>
module attributes {stable_mosaic.version = 11 : i64} {
  func.func @_convstack_kernel(%arg0: memref<1x384xf32, #tpu.memory_space<vmem>>, %arg1: memref<1x384xf32, #tpu.memory_space<vmem>>, %arg2: memref<8x3xf32, #tpu.memory_space<vmem>>, %arg3: memref<1x24xf32, #tpu.memory_space<vmem>>, %arg4: memref<8x1xf32, #tpu.memory_space<vmem>>, %arg5: memref<1x1xf32, #tpu.memory_space<vmem>>, %arg6: memref<1x384xf32, #tpu.memory_space<vmem>>) attributes {dimension_semantics = [], scalar_prefetch = 0 : i64, scratch_operands = 0 : i64, tpu.core_type = #tpu.core_type<tc>} {
    %c0 = arith.constant 0 : index
    %c0_0 = arith.constant 0 : index
    %0 = vector.load %arg0[%c0, %c0_0] : memref<1x384xf32, #tpu.memory_space<vmem>>, vector<1x384xf32>
    %c0_1 = arith.constant 0 : index
    %c0_2 = arith.constant 0 : index
    %1 = vector.load %arg1[%c0_1, %c0_2] : memref<1x384xf32, #tpu.memory_space<vmem>>, vector<1x384xf32>
    %c0_3 = arith.constant 0 : index
    %c0_4 = arith.constant 0 : index
    %2 = vector.load %arg2[%c0_3, %c0_4] : memref<8x3xf32, #tpu.memory_space<vmem>>, vector<8x3xf32>
    %c0_5 = arith.constant 0 : index
    %c0_6 = arith.constant 0 : index
    %3 = vector.load %arg4[%c0_5, %c0_6] : memref<8x1xf32, #tpu.memory_space<vmem>>, vector<8x1xf32>
    %cst = arith.constant 0.000000e+00 : f32
    %4 = vector.broadcast %cst : f32 to vector<1x1xf32>
    %5 = vector.extract_strided_slice %0 {offsets = [0, 0], sizes = [1, 383], strides = [1, 1]} : vector<1x384xf32> to vector<1x383xf32>
    %6 = tpu.concatenate %4, %5 in 1 : vector<1x1xf32>, vector<1x383xf32> -> vector<1x384xf32>
    %7 = vector.extract_strided_slice %0 {offsets = [0, 1], sizes = [1, 383], strides = [1, 1]} : vector<1x384xf32> to vector<1x383xf32>
    %cst_7 = arith.constant 0.000000e+00 : f32
    %8 = vector.broadcast %cst_7 : f32 to vector<1x1xf32>
    %9 = tpu.concatenate %7, %8 in 1 : vector<1x383xf32>, vector<1x1xf32> -> vector<1x384xf32>
    %10 = tpu.concatenate %6, %0, %9 in 0 : vector<1x384xf32>, vector<1x384xf32>, vector<1x384xf32> -> vector<3x384xf32>
    %cst_8 = arith.constant dense<0.000000e+00> : vector<8x384xf32>
    %11 = tpu.matmul %2, %10, %cst_8 {dimension_numbers = #tpu.dot_dimension_numbers<[1], [0], [0], [1], [0, 0, 1, 1], [], []>} : vector<8x3xf32>, vector<3x384xf32>, vector<8x384xf32> -> vector<8x384xf32>
    %12 = vector.broadcast %3 : vector<8x1xf32> to vector<8x384xf32>
    %13 = arith.addf %11, %12 : vector<8x384xf32>
    %cst_9 = arith.constant 0.000000e+00 : f32
    %14 = vector.broadcast %cst_9 : f32 to vector<8x384xf32>
    %15 = arith.maximumf %13, %14 : vector<8x384xf32>
    %16 = vector.broadcast %1 : vector<1x384xf32> to vector<8x384xf32>
    %17 = arith.mulf %15, %16 : vector<8x384xf32>
    %c0_10 = arith.constant 0 : index
    %c0_11 = arith.constant 0 : index
    %18 = vector.load %arg3[%c0_10, %c0_11] : memref<1x24xf32, #tpu.memory_space<vmem>>, vector<1x24xf32>
    %c0_12 = arith.constant 0 : index
    %c0_13 = arith.constant 0 : index
    %19 = vector.load %arg5[%c0_12, %c0_13] : memref<1x1xf32, #tpu.memory_space<vmem>>, vector<1x1xf32>
    %cst_14 = arith.constant 0.000000e+00 : f32
    %20 = vector.broadcast %cst_14 : f32 to vector<8x1xf32>
    %21 = vector.extract_strided_slice %17 {offsets = [0, 0], sizes = [8, 383], strides = [1, 1]} : vector<8x384xf32> to vector<8x383xf32>
    %22 = tpu.concatenate %20, %21 in 1 : vector<8x1xf32>, vector<8x383xf32> -> vector<8x384xf32>
    %23 = vector.extract_strided_slice %17 {offsets = [0, 1], sizes = [8, 383], strides = [1, 1]} : vector<8x384xf32> to vector<8x383xf32>
    %cst_15 = arith.constant 0.000000e+00 : f32
    %24 = vector.broadcast %cst_15 : f32 to vector<8x1xf32>
    %25 = tpu.concatenate %23, %24 in 1 : vector<8x383xf32>, vector<8x1xf32> -> vector<8x384xf32>
    %26 = tpu.concatenate %22, %17, %25 in 0 : vector<8x384xf32>, vector<8x384xf32>, vector<8x384xf32> -> vector<24x384xf32>
    %cst_16 = arith.constant dense<0.000000e+00> : vector<1x384xf32>
    %27 = tpu.matmul %18, %26, %cst_16 {dimension_numbers = #tpu.dot_dimension_numbers<[1], [0], [0], [1], [0, 0, 1, 1], [], []>} : vector<1x24xf32>, vector<24x384xf32>, vector<1x384xf32> -> vector<1x384xf32>
    %28 = vector.broadcast %19 : vector<1x1xf32> to vector<1x384xf32>
    %29 = arith.addf %27, %28 : vector<1x384xf32>
    %c0_17 = arith.constant 0 : index
    %c0_18 = arith.constant 0 : index
    %30 = vector.load %arg6[%c0_17, %c0_18] : memref<1x384xf32, #tpu.memory_space<vmem>>, vector<1x384xf32>
    tpu.vector_store %arg6[%c0_17, %c0_18], %29 {strides = array<i32>} : memref<1x384xf32, #tpu.memory_space<vmem>>, vector<1x384xf32>,
    return
  }
}

module attributes {stable_mosaic.version = 11 : i64} {
  func.func @_classifier_kernel(%arg0: memref<16x128xf32, #tpu.memory_space<vmem>>, %arg1: memref<1x128xf32, #tpu.memory_space<vmem>>, %arg2: memref<128x2xf32, #tpu.memory_space<vmem>>, %arg3: memref<16x48xf32, #tpu.memory_space<vmem>>, %arg4: memref<16x48xf32, #tpu.memory_space<vmem>>, %arg5: memref<16x1xf32, #tpu.memory_space<vmem>>, %arg6: memref<16x1xf32, #tpu.memory_space<vmem>>, %arg7: memref<5x16xf32, #tpu.memory_space<vmem>>, %arg8: memref<5x1xf32, #tpu.memory_space<vmem>>, %arg9: memref<5x2xf32, #tpu.memory_space<vmem>>) attributes {dimension_semantics = [], scalar_prefetch = 0 : i64, scratch_operands = 0 : i64, tpu.core_type = #tpu.core_type<tc>} {
    %c0 = arith.constant 0 : index
    %c0_0 = arith.constant 0 : index
    %0 = vector.load %arg0[%c0, %c0_0] : memref<16x128xf32, #tpu.memory_space<vmem>>, vector<16x128xf32>
    %c0_1 = arith.constant 0 : index
    %c0_2 = arith.constant 0 : index
    %1 = vector.load %arg1[%c0_1, %c0_2] : memref<1x128xf32, #tpu.memory_space<vmem>>, vector<1x128xf32>
    %c0_3 = arith.constant 0 : index
    %c0_4 = arith.constant 0 : index
    %2 = vector.load %arg3[%c0_3, %c0_4] : memref<16x48xf32, #tpu.memory_space<vmem>>, vector<16x48xf32>
    %c0_5 = arith.constant 0 : index
    %c0_6 = arith.constant 0 : index
    %3 = vector.load %arg5[%c0_5, %c0_6] : memref<16x1xf32, #tpu.memory_space<vmem>>, vector<16x1xf32>
    %cst = arith.constant 0.000000e+00 : f32
    %4 = vector.broadcast %cst : f32 to vector<16x1xf32>
    %5 = vector.extract_strided_slice %0 {offsets = [0, 0], sizes = [16, 127], strides = [1, 1]} : vector<16x128xf32> to vector<16x127xf32>
    %6 = tpu.concatenate %4, %5 in 1 : vector<16x1xf32>, vector<16x127xf32> -> vector<16x128xf32>
    %7 = vector.extract_strided_slice %0 {offsets = [0, 1], sizes = [16, 127], strides = [1, 1]} : vector<16x128xf32> to vector<16x127xf32>
    %cst_7 = arith.constant 0.000000e+00 : f32
    %8 = vector.broadcast %cst_7 : f32 to vector<16x1xf32>
    %9 = tpu.concatenate %7, %8 in 1 : vector<16x127xf32>, vector<16x1xf32> -> vector<16x128xf32>
    %10 = tpu.concatenate %6, %0, %9 in 0 : vector<16x128xf32>, vector<16x128xf32>, vector<16x128xf32> -> vector<48x128xf32>
    %cst_8 = arith.constant dense<0.000000e+00> : vector<16x128xf32>
    %11 = tpu.matmul %2, %10, %cst_8 {dimension_numbers = #tpu.dot_dimension_numbers<[1], [0], [0], [1], [0, 0, 1, 1], [], []>} : vector<16x48xf32>, vector<48x128xf32>, vector<16x128xf32> -> vector<16x128xf32>
    %12 = vector.broadcast %3 : vector<16x1xf32> to vector<16x128xf32>
    %13 = arith.addf %11, %12 : vector<16x128xf32>
    %cst_9 = arith.constant 0.000000e+00 : f32
    %14 = vector.broadcast %cst_9 : f32 to vector<16x128xf32>
    %15 = arith.maximumf %13, %14 : vector<16x128xf32>
    %16 = vector.broadcast %1 : vector<1x128xf32> to vector<16x128xf32>
    %17 = arith.mulf %15, %16 : vector<16x128xf32>
    %c0_10 = arith.constant 0 : index
    %c0_11 = arith.constant 0 : index
    %18 = vector.load %arg4[%c0_10, %c0_11] : memref<16x48xf32, #tpu.memory_space<vmem>>, vector<16x48xf32>
    %c0_12 = arith.constant 0 : index
    %c0_13 = arith.constant 0 : index
    %19 = vector.load %arg6[%c0_12, %c0_13] : memref<16x1xf32, #tpu.memory_space<vmem>>, vector<16x1xf32>
    %cst_14 = arith.constant 0.000000e+00 : f32
    %20 = vector.broadcast %cst_14 : f32 to vector<16x1xf32>
    %21 = vector.extract_strided_slice %17 {offsets = [0, 0], sizes = [16, 127], strides = [1, 1]} : vector<16x128xf32> to vector<16x127xf32>
    %22 = tpu.concatenate %20, %21 in 1 : vector<16x1xf32>, vector<16x127xf32> -> vector<16x128xf32>
    %23 = vector.extract_strided_slice %17 {offsets = [0, 1], sizes = [16, 127], strides = [1, 1]} : vector<16x128xf32> to vector<16x127xf32>
    %cst_15 = arith.constant 0.000000e+00 : f32
    %24 = vector.broadcast %cst_15 : f32 to vector<16x1xf32>
    %25 = tpu.concatenate %23, %24 in 1 : vector<16x127xf32>, vector<16x1xf32> -> vector<16x128xf32>
    %26 = tpu.concatenate %22, %17, %25 in 0 : vector<16x128xf32>, vector<16x128xf32>, vector<16x128xf32> -> vector<48x128xf32>
    %cst_16 = arith.constant dense<0.000000e+00> : vector<16x128xf32>
    %27 = tpu.matmul %18, %26, %cst_16 {dimension_numbers = #tpu.dot_dimension_numbers<[1], [0], [0], [1], [0, 0, 1, 1], [], []>} : vector<16x48xf32>, vector<48x128xf32>, vector<16x128xf32> -> vector<16x128xf32>
    %28 = vector.broadcast %19 : vector<16x1xf32> to vector<16x128xf32>
    %29 = arith.addf %27, %28 : vector<16x128xf32>
    %c0_17 = arith.constant 0 : index
    %c0_18 = arith.constant 0 : index
    %30 = vector.load %arg2[%c0_17, %c0_18] : memref<128x2xf32, #tpu.memory_space<vmem>>, vector<128x2xf32>
    %cst_19 = arith.constant dense<0.000000e+00> : vector<16x2xf32>
    %31 = tpu.matmul %29, %30, %cst_19 {dimension_numbers = #tpu.dot_dimension_numbers<[1], [0], [0], [1], [0, 0, 1, 1], [], []>} : vector<16x128xf32>, vector<128x2xf32>, vector<16x2xf32> -> vector<16x2xf32>
    %c0_20 = arith.constant 0 : index
    %c0_21 = arith.constant 0 : index
    %32 = vector.load %arg7[%c0_20, %c0_21] : memref<5x16xf32, #tpu.memory_space<vmem>>, vector<5x16xf32>
    %cst_22 = arith.constant dense<0.000000e+00> : vector<5x2xf32>
    %33 = tpu.matmul %32, %31, %cst_22 {dimension_numbers = #tpu.dot_dimension_numbers<[1], [0], [0], [1], [0, 0, 1, 1], [], []>} : vector<5x16xf32>, vector<16x2xf32>, vector<5x2xf32> -> vector<5x2xf32>
    %c0_23 = arith.constant 0 : index
    %c0_24 = arith.constant 0 : index
    %34 = vector.load %arg8[%c0_23, %c0_24] : memref<5x1xf32, #tpu.memory_space<vmem>>, vector<5x1xf32>
    %35 = vector.broadcast %34 : vector<5x1xf32> to vector<5x2xf32>
    %36 = arith.addf %33, %35 : vector<5x2xf32>
    %c0_25 = arith.constant 0 : index
    %c0_26 = arith.constant 0 : index
    %37 = vector.load %arg9[%c0_25, %c0_26] : memref<5x2xf32, #tpu.memory_space<vmem>>, vector<5x2xf32>
    tpu.vector_store %arg9[%c0_25, %c0_26], %36 {strides = array<i32>} : memref<5x2xf32, #tpu.memory_space<vmem>>, vector<5x2xf32>,
    return
  }
}

module attributes {stable_mosaic.version = 11 : i64} {
  func.func @_koopman_kernel(%arg0: i32, %arg1: memref<1x16x16xf32, #tpu.memory_space<vmem>>, %arg2: memref<1x1x16xf32, #tpu.memory_space<vmem>>, %arg3: memref<1x1x16xf32, #tpu.memory_space<vmem>>, %arg4: memref<1x7x16xf32, #tpu.memory_space<vmem>>, %arg5: memref<1x4x16xf32, #tpu.memory_space<vmem>>) attributes {dimension_semantics = [#tpu.dimension_semantics<parallel>], iteration_bounds = array<i64: 2>, scalar_prefetch = 0 : i64, scratch_operands = 0 : i64, tpu.core_type = #tpu.core_type<tc>, window_params = [{transform_indices = @transform_0, window_bounds = array<i64: 1, 16, 16>}, {transform_indices = @transform_1, window_bounds = array<i64: 1, 1, 16>}, {transform_indices = @transform_2, window_bounds = array<i64: 1, 1, 16>}, {transform_indices = @transform_3, window_bounds = array<i64: 1, 7, 16>}, {transform_indices = @transform_4, window_bounds = array<i64: 1, 4, 16>}]} {
    %c0 = arith.constant 0 : index
    %c0_0 = arith.constant 0 : index
    %c0_1 = arith.constant 0 : index
    %0 = vector.load %arg1[%c0, %c0_0, %c0_1] : memref<1x16x16xf32, #tpu.memory_space<vmem>>, vector<1x16x16xf32>
    %1 = vector.shape_cast %0 : vector<1x16x16xf32> to vector<16x16xf32>
    %c0_2 = arith.constant 0 : index
    %c0_3 = arith.constant 0 : index
    %c0_4 = arith.constant 0 : index
    %2 = vector.load %arg2[%c0_2, %c0_3, %c0_4] : memref<1x1x16xf32, #tpu.memory_space<vmem>>, vector<1x1x16xf32>
    %3 = vector.shape_cast %2 : vector<1x1x16xf32> to vector<1x16xf32>
    %cst = arith.constant dense<0.000000e+00> : vector<1x16xf32>
    %4 = tpu.matmul %3, %1, %cst {dimension_numbers = #tpu.dot_dimension_numbers<[1], [0], [0], [1], [0, 0, 1, 1], [], []>} : vector<1x16xf32>, vector<16x16xf32>, vector<1x16xf32> -> vector<1x16xf32>
    %c0_5 = arith.constant 0 : index
    %c0_6 = arith.constant 0 : index
    %c0_7 = arith.constant 0 : index
    %5 = vector.load %arg4[%c0_5, %c0_6, %c0_7] : memref<1x7x16xf32, #tpu.memory_space<vmem>>, vector<1x1x16xf32>
    %6 = vector.shape_cast %5 : vector<1x1x16xf32> to vector<1x16xf32>
    %7 = vector.shape_cast %4 : vector<1x16xf32> to vector<1x1x16xf32>
    tpu.vector_store %arg4[%c0_5, %c0_6, %c0_7], %7 {strides = array<i32>} : memref<1x7x16xf32, #tpu.memory_space<vmem>>, vector<1x1x16xf32>,
    %cst_8 = arith.constant dense<0.000000e+00> : vector<1x16xf32>
    %8 = tpu.matmul %4, %1, %cst_8 {dimension_numbers = #tpu.dot_dimension_numbers<[1], [0], [0], [1], [0, 0, 1, 1], [], []>} : vector<1x16xf32>, vector<16x16xf32>, vector<1x16xf32> -> vector<1x16xf32>
    %c0_9 = arith.constant 0 : index
    %c1 = arith.constant 1 : index
    %c0_10 = arith.constant 0 : index
    %9 = vector.load %arg4[%c0_9, %c1, %c0_10] : memref<1x7x16xf32, #tpu.memory_space<vmem>>, vector<1x1x16xf32>
    %10 = vector.shape_cast %9 : vector<1x1x16xf32> to vector<1x16xf32>
    %11 = vector.shape_cast %8 : vector<1x16xf32> to vector<1x1x16xf32>
    tpu.vector_store %arg4[%c0_9, %c1, %c0_10], %11 {strides = array<i32>} : memref<1x7x16xf32, #tpu.memory_space<vmem>>, vector<1x1x16xf32>,
    %cst_11 = arith.constant dense<0.000000e+00> : vector<1x16xf32>
    %12 = tpu.matmul %8, %1, %cst_11 {dimension_numbers = #tpu.dot_dimension_numbers<[1], [0], [0], [1], [0, 0, 1, 1], [], []>} : vector<1x16xf32>, vector<16x16xf32>, vector<1x16xf32> -> vector<1x16xf32>
    %c0_12 = arith.constant 0 : index
    %c2 = arith.constant 2 : index
    %c0_13 = arith.constant 0 : index
    %13 = vector.load %arg4[%c0_12, %c2, %c0_13] : memref<1x7x16xf32, #tpu.memory_space<vmem>>, vector<1x1x16xf32>
    %14 = vector.shape_cast %13 : vector<1x1x16xf32> to vector<1x16xf32>
    %15 = vector.shape_cast %12 : vector<1x16xf32> to vector<1x1x16xf32>
    tpu.vector_store %arg4[%c0_12, %c2, %c0_13], %15 {strides = array<i32>} : memref<1x7x16xf32, #tpu.memory_space<vmem>>, vector<1x1x16xf32>,
    %cst_14 = arith.constant dense<0.000000e+00> : vector<1x16xf32>
    %16 = tpu.matmul %12, %1, %cst_14 {dimension_numbers = #tpu.dot_dimension_numbers<[1], [0], [0], [1], [0, 0, 1, 1], [], []>} : vector<1x16xf32>, vector<16x16xf32>, vector<1x16xf32> -> vector<1x16xf32>
    %c0_15 = arith.constant 0 : index
    %c3 = arith.constant 3 : index
    %c0_16 = arith.constant 0 : index
    %17 = vector.load %arg4[%c0_15, %c3, %c0_16] : memref<1x7x16xf32, #tpu.memory_space<vmem>>, vector<1x1x16xf32>
    %18 = vector.shape_cast %17 : vector<1x1x16xf32> to vector<1x16xf32>
    %19 = vector.shape_cast %16 : vector<1x16xf32> to vector<1x1x16xf32>
    tpu.vector_store %arg4[%c0_15, %c3, %c0_16], %19 {strides = array<i32>} : memref<1x7x16xf32, #tpu.memory_space<vmem>>, vector<1x1x16xf32>,
    %cst_17 = arith.constant dense<0.000000e+00> : vector<1x16xf32>
    %20 = tpu.matmul %16, %1, %cst_17 {dimension_numbers = #tpu.dot_dimension_numbers<[1], [0], [0], [1], [0, 0, 1, 1], [], []>} : vector<1x16xf32>, vector<16x16xf32>, vector<1x16xf32> -> vector<1x16xf32>
    %c0_18 = arith.constant 0 : index
    %c4 = arith.constant 4 : index
    %c0_19 = arith.constant 0 : index
    %21 = vector.load %arg4[%c0_18, %c4, %c0_19] : memref<1x7x16xf32, #tpu.memory_space<vmem>>, vector<1x1x16xf32>
    %22 = vector.shape_cast %21 : vector<1x1x16xf32> to vector<1x16xf32>
    %23 = vector.shape_cast %20 : vector<1x16xf32> to vector<1x1x16xf32>
    tpu.vector_store %arg4[%c0_18, %c4, %c0_19], %23 {strides = array<i32>} : memref<1x7x16xf32, #tpu.memory_space<vmem>>, vector<1x1x16xf32>,
    %cst_20 = arith.constant dense<0.000000e+00> : vector<1x16xf32>
    %24 = tpu.matmul %20, %1, %cst_20 {dimension_numbers = #tpu.dot_dimension_numbers<[1], [0], [0], [1], [0, 0, 1, 1], [], []>} : vector<1x16xf32>, vector<16x16xf32>, vector<1x16xf32> -> vector<1x16xf32>
    %c0_21 = arith.constant 0 : index
    %c5 = arith.constant 5 : index
    %c0_22 = arith.constant 0 : index
    %25 = vector.load %arg4[%c0_21, %c5, %c0_22] : memref<1x7x16xf32, #tpu.memory_space<vmem>>, vector<1x1x16xf32>
    %26 = vector.shape_cast %25 : vector<1x1x16xf32> to vector<1x16xf32>
    %27 = vector.shape_cast %24 : vector<1x16xf32> to vector<1x1x16xf32>
    tpu.vector_store %arg4[%c0_21, %c5, %c0_22], %27 {strides = array<i32>} : memref<1x7x16xf32, #tpu.memory_space<vmem>>, vector<1x1x16xf32>,
    %cst_23 = arith.constant dense<0.000000e+00> : vector<1x16xf32>
    %28 = tpu.matmul %24, %1, %cst_23 {dimension_numbers = #tpu.dot_dimension_numbers<[1], [0], [0], [1], [0, 0, 1, 1], [], []>} : vector<1x16xf32>, vector<16x16xf32>, vector<1x16xf32> -> vector<1x16xf32>
    %c0_24 = arith.constant 0 : index
    %c6 = arith.constant 6 : index
    %c0_25 = arith.constant 0 : index
    %29 = vector.load %arg4[%c0_24, %c6, %c0_25] : memref<1x7x16xf32, #tpu.memory_space<vmem>>, vector<1x1x16xf32>
    %30 = vector.shape_cast %29 : vector<1x1x16xf32> to vector<1x16xf32>
    %31 = vector.shape_cast %28 : vector<1x16xf32> to vector<1x1x16xf32>
    tpu.vector_store %arg4[%c0_24, %c6, %c0_25], %31 {strides = array<i32>} : memref<1x7x16xf32, #tpu.memory_space<vmem>>, vector<1x1x16xf32>,
    %c0_26 = arith.constant 0 : index
    %c0_27 = arith.constant 0 : index
    %c0_28 = arith.constant 0 : index
    %32 = vector.load %arg3[%c0_26, %c0_27, %c0_28] : memref<1x1x16xf32, #tpu.memory_space<vmem>>, vector<1x1x16xf32>
    %33 = vector.shape_cast %32 : vector<1x1x16xf32> to vector<1x16xf32>
    %cst_29 = arith.constant dense<0.000000e+00> : vector<1x16xf32>
    %34 = tpu.matmul %33, %1, %cst_29 {dimension_numbers = #tpu.dot_dimension_numbers<[1], [0], [0], [1], [0, 0, 1, 1], [], []>} : vector<1x16xf32>, vector<16x16xf32>, vector<1x16xf32> -> vector<1x16xf32>
    %c0_30 = arith.constant 0 : index
    %c0_31 = arith.constant 0 : index
    %c0_32 = arith.constant 0 : index
    %35 = vector.load %arg5[%c0_30, %c0_31, %c0_32] : memref<1x4x16xf32, #tpu.memory_space<vmem>>, vector<1x1x16xf32>
    %36 = vector.shape_cast %35 : vector<1x1x16xf32> to vector<1x16xf32>
    %37 = vector.shape_cast %34 : vector<1x16xf32> to vector<1x1x16xf32>
    tpu.vector_store %arg5[%c0_30, %c0_31, %c0_32], %37 {strides = array<i32>} : memref<1x4x16xf32, #tpu.memory_space<vmem>>, vector<1x1x16xf32>,
    %cst_33 = arith.constant dense<0.000000e+00> : vector<1x16xf32>
    %38 = tpu.matmul %34, %1, %cst_33 {dimension_numbers = #tpu.dot_dimension_numbers<[1], [0], [0], [1], [0, 0, 1, 1], [], []>} : vector<1x16xf32>, vector<16x16xf32>, vector<1x16xf32> -> vector<1x16xf32>
    %c0_34 = arith.constant 0 : index
    %c1_35 = arith.constant 1 : index
    %c0_36 = arith.constant 0 : index
    %39 = vector.load %arg5[%c0_34, %c1_35, %c0_36] : memref<1x4x16xf32, #tpu.memory_space<vmem>>, vector<1x1x16xf32>
    %40 = vector.shape_cast %39 : vector<1x1x16xf32> to vector<1x16xf32>
    %41 = vector.shape_cast %38 : vector<1x16xf32> to vector<1x1x16xf32>
    tpu.vector_store %arg5[%c0_34, %c1_35, %c0_36], %41 {strides = array<i32>} : memref<1x4x16xf32, #tpu.memory_space<vmem>>, vector<1x1x16xf32>,
    %cst_37 = arith.constant dense<0.000000e+00> : vector<1x16xf32>
    %42 = tpu.matmul %38, %1, %cst_37 {dimension_numbers = #tpu.dot_dimension_numbers<[1], [0], [0], [1], [0, 0, 1, 1], [], []>} : vector<1x16xf32>, vector<16x16xf32>, vector<1x16xf32> -> vector<1x16xf32>
    %c0_38 = arith.constant 0 : index
    %c2_39 = arith.constant 2 : index
    %c0_40 = arith.constant 0 : index
    %43 = vector.load %arg5[%c0_38, %c2_39, %c0_40] : memref<1x4x16xf32, #tpu.memory_space<vmem>>, vector<1x1x16xf32>
    %44 = vector.shape_cast %43 : vector<1x1x16xf32> to vector<1x16xf32>
    %45 = vector.shape_cast %42 : vector<1x16xf32> to vector<1x1x16xf32>
    tpu.vector_store %arg5[%c0_38, %c2_39, %c0_40], %45 {strides = array<i32>} : memref<1x4x16xf32, #tpu.memory_space<vmem>>, vector<1x1x16xf32>,
    %cst_41 = arith.constant dense<0.000000e+00> : vector<1x16xf32>
    %46 = tpu.matmul %42, %1, %cst_41 {dimension_numbers = #tpu.dot_dimension_numbers<[1], [0], [0], [1], [0, 0, 1, 1], [], []>} : vector<1x16xf32>, vector<16x16xf32>, vector<1x16xf32> -> vector<1x16xf32>
    %c0_42 = arith.constant 0 : index
    %c3_43 = arith.constant 3 : index
    %c0_44 = arith.constant 0 : index
    %47 = vector.load %arg5[%c0_42, %c3_43, %c0_44] : memref<1x4x16xf32, #tpu.memory_space<vmem>>, vector<1x1x16xf32>
    %48 = vector.shape_cast %47 : vector<1x1x16xf32> to vector<1x16xf32>
    %49 = vector.shape_cast %46 : vector<1x16xf32> to vector<1x1x16xf32>
    tpu.vector_store %arg5[%c0_42, %c3_43, %c0_44], %49 {strides = array<i32>} : memref<1x4x16xf32, #tpu.memory_space<vmem>>, vector<1x1x16xf32>,
    return
  }
  func.func @transform_0(%arg0: i32) -> (i32, i32, i32) {
    %c0_i32 = arith.constant 0 : i32
    %c0_i32_0 = arith.constant 0 : i32
    %c0_i32_1 = arith.constant 0 : i32
    return %arg0, %c0_i32, %c0_i32_0 : i32, i32, i32
  }
  func.func @transform_1(%arg0: i32) -> (i32, i32, i32) {
    %c0_i32 = arith.constant 0 : i32
    %c0_i32_0 = arith.constant 0 : i32
    %c0_i32_1 = arith.constant 0 : i32
    return %arg0, %c0_i32, %c0_i32_0 : i32, i32, i32
  }
  func.func @transform_2(%arg0: i32) -> (i32, i32, i32) {
    %c0_i32 = arith.constant 0 : i32
    %c0_i32_0 = arith.constant 0 : i32
    %c0_i32_1 = arith.constant 0 : i32
    return %arg0, %c0_i32, %c0_i32_0 : i32, i32, i32
  }
  func.func @transform_3(%arg0: i32) -> (i32, i32, i32) {
    %c0_i32 = arith.constant 0 : i32
    %c0_i32_0 = arith.constant 0 : i32
    %c0_i32_1 = arith.constant 0 : i32
    return %arg0, %c0_i32, %c0_i32_0 : i32, i32, i32
  }
  func.func @transform_4(%arg0: i32) -> (i32, i32, i32) {
    %c0_i32 = arith.constant 0 : i32
    %c0_i32_0 = arith.constant 0 : i32
    %c0_i32_1 = arith.constant 0 : i32
    return %arg0, %c0_i32, %c0_i32_0 : i32, i32, i32
  }
}

module attributes {stable_mosaic.version = 11 : i64} {
  func.func @_convstack_kernel(%arg0: memref<1x896xf32, #tpu.memory_space<vmem>>, %arg1: memref<1x896xf32, #tpu.memory_space<vmem>>, %arg2: memref<8x3xf32, #tpu.memory_space<vmem>>, %arg3: memref<1x24xf32, #tpu.memory_space<vmem>>, %arg4: memref<8x1xf32, #tpu.memory_space<vmem>>, %arg5: memref<1x1xf32, #tpu.memory_space<vmem>>, %arg6: memref<1x896xf32, #tpu.memory_space<vmem>>) attributes {dimension_semantics = [], scalar_prefetch = 0 : i64, scratch_operands = 0 : i64, tpu.core_type = #tpu.core_type<tc>} {
    %c0 = arith.constant 0 : index
    %c0_0 = arith.constant 0 : index
    %0 = vector.load %arg0[%c0, %c0_0] : memref<1x896xf32, #tpu.memory_space<vmem>>, vector<1x896xf32>
    %c0_1 = arith.constant 0 : index
    %c0_2 = arith.constant 0 : index
    %1 = vector.load %arg1[%c0_1, %c0_2] : memref<1x896xf32, #tpu.memory_space<vmem>>, vector<1x896xf32>
    %c0_3 = arith.constant 0 : index
    %c0_4 = arith.constant 0 : index
    %2 = vector.load %arg2[%c0_3, %c0_4] : memref<8x3xf32, #tpu.memory_space<vmem>>, vector<8x3xf32>
    %c0_5 = arith.constant 0 : index
    %c0_6 = arith.constant 0 : index
    %3 = vector.load %arg4[%c0_5, %c0_6] : memref<8x1xf32, #tpu.memory_space<vmem>>, vector<8x1xf32>
    %cst = arith.constant 0.000000e+00 : f32
    %4 = vector.broadcast %cst : f32 to vector<1x2xf32>
    %5 = vector.extract_strided_slice %0 {offsets = [0, 0], sizes = [1, 894], strides = [1, 1]} : vector<1x896xf32> to vector<1x894xf32>
    %6 = tpu.concatenate %4, %5 in 1 : vector<1x2xf32>, vector<1x894xf32> -> vector<1x896xf32>
    %cst_7 = arith.constant 0.000000e+00 : f32
    %7 = vector.broadcast %cst_7 : f32 to vector<1x1xf32>
    %8 = vector.extract_strided_slice %0 {offsets = [0, 0], sizes = [1, 895], strides = [1, 1]} : vector<1x896xf32> to vector<1x895xf32>
    %9 = tpu.concatenate %7, %8 in 1 : vector<1x1xf32>, vector<1x895xf32> -> vector<1x896xf32>
    %10 = tpu.concatenate %6, %9, %0 in 0 : vector<1x896xf32>, vector<1x896xf32>, vector<1x896xf32> -> vector<3x896xf32>
    %cst_8 = arith.constant dense<0.000000e+00> : vector<8x896xf32>
    %11 = tpu.matmul %2, %10, %cst_8 {dimension_numbers = #tpu.dot_dimension_numbers<[1], [0], [0], [1], [0, 0, 1, 1], [], []>} : vector<8x3xf32>, vector<3x896xf32>, vector<8x896xf32> -> vector<8x896xf32>
    %12 = vector.broadcast %3 : vector<8x1xf32> to vector<8x896xf32>
    %13 = arith.addf %11, %12 : vector<8x896xf32>
    %cst_9 = arith.constant 0.000000e+00 : f32
    %14 = vector.broadcast %cst_9 : f32 to vector<8x896xf32>
    %15 = arith.maximumf %13, %14 : vector<8x896xf32>
    %16 = vector.broadcast %1 : vector<1x896xf32> to vector<8x896xf32>
    %17 = arith.mulf %15, %16 : vector<8x896xf32>
    %c0_10 = arith.constant 0 : index
    %c0_11 = arith.constant 0 : index
    %18 = vector.load %arg3[%c0_10, %c0_11] : memref<1x24xf32, #tpu.memory_space<vmem>>, vector<1x24xf32>
    %c0_12 = arith.constant 0 : index
    %c0_13 = arith.constant 0 : index
    %19 = vector.load %arg5[%c0_12, %c0_13] : memref<1x1xf32, #tpu.memory_space<vmem>>, vector<1x1xf32>
    %cst_14 = arith.constant 0.000000e+00 : f32
    %20 = vector.broadcast %cst_14 : f32 to vector<8x2xf32>
    %21 = vector.extract_strided_slice %17 {offsets = [0, 0], sizes = [8, 894], strides = [1, 1]} : vector<8x896xf32> to vector<8x894xf32>
    %22 = tpu.concatenate %20, %21 in 1 : vector<8x2xf32>, vector<8x894xf32> -> vector<8x896xf32>
    %cst_15 = arith.constant 0.000000e+00 : f32
    %23 = vector.broadcast %cst_15 : f32 to vector<8x1xf32>
    %24 = vector.extract_strided_slice %17 {offsets = [0, 0], sizes = [8, 895], strides = [1, 1]} : vector<8x896xf32> to vector<8x895xf32>
    %25 = tpu.concatenate %23, %24 in 1 : vector<8x1xf32>, vector<8x895xf32> -> vector<8x896xf32>
    %26 = tpu.concatenate %22, %25, %17 in 0 : vector<8x896xf32>, vector<8x896xf32>, vector<8x896xf32> -> vector<24x896xf32>
    %cst_16 = arith.constant dense<0.000000e+00> : vector<1x896xf32>
    %27 = tpu.matmul %18, %26, %cst_16 {dimension_numbers = #tpu.dot_dimension_numbers<[1], [0], [0], [1], [0, 0, 1, 1], [], []>} : vector<1x24xf32>, vector<24x896xf32>, vector<1x896xf32> -> vector<1x896xf32>
    %28 = vector.broadcast %19 : vector<1x1xf32> to vector<1x896xf32>
    %29 = arith.addf %27, %28 : vector<1x896xf32>
    %c0_17 = arith.constant 0 : index
    %c0_18 = arith.constant 0 : index
    %30 = vector.load %arg6[%c0_17, %c0_18] : memref<1x896xf32, #tpu.memory_space<vmem>>, vector<1x896xf32>
    tpu.vector_store %arg6[%c0_17, %c0_18], %29 {strides = array<i32>} : memref<1x896xf32, #tpu.memory_space<vmem>>, vector<1x896xf32>,
    return
  }
}

</mosaic_0001>

<bundles_post_ra>
// kernel: squeeze.7
= control target key start
LH: loop header
LB: loop body
LE: loop exit
PB: predicated region body
PF: predicated region fallthrough
CT: control target
= control target key end

     0   :  { %vm204_vm0 = vcmask 982016   ;;  %s293_s8 = smov 116   ;;  %vm218_vm1 = vcmask 998400   ;;  %s294_s9 = smov 124   ;;  %vm7_vm2 = vcmask 80896   ;;  %vm208_vm3 = vcmask 64512   ;;  %s468_s0 = inlined_call_operand.vmem [shape: f32[320], index: 0, kind: input, shape index: {}]   ;;  %s469_s1 = inlined_call_operand.vmem [shape: f32[32,10], index: 1, kind: output, shape index: {}]  }
   0x1   :  { %v4_v0 = vld [vmem:[%s468_s0] sm:$0xf]  ;;  %s292_s0 = smov 126   ;;  %s295_s10 = smov 8   ;;  %vm211_vm4 = vcmask 80960   ;;  %vm222_vm5 = vcmask 48128  }
   0x2   :  { %5 = vst [vmem:[#allocation0] sm:$0xf] %v4_v0  ;;  %s296_s11 = smov 118   ;;  %s297_s12 = smov 6   ;;  %vm225_vm6 = vcmask 80944  }
   0x3   :  { %s298_s13 = smov 114   ;;  %s299_s14 = smov 108  }
   0x4   :  { %s300_s15 = smov 106   ;;  %s301_s16 = smov 104  }
   0x5   :  { %s302_s17 = smov 98   ;;  %s303_s18 = smov 96  }
   0x6   :  { %s304_s19 = smov 94   ;;  %s305_s20 = smov 88  }
   0x7   :  { %s306_s21 = smov 86   ;;  %s307_s22 = smov 84  }
   0x8   :  { %s308_s23 = smov 78   ;;  %s309_s24 = smov 76  }
   0x9   :  { %v10_v1 = vld [vmem:[#allocation0 + $0x1] sm:$0x1]   ;;  %v201_v3 = vld [vmem:[#allocation0] sm:$0x1]   ;;  %v17_v5 = vld [vmem:[#allocation0 + $0x2] sm:$0x1]  }
   0xa   :  { %v30_v2 = vld [vmem:[#allocation0 + $0x1] sm:$0x1]   ;;  %11 = vrot.lane.b32.xlu0 %v10_v1, %s292_s0  ;;  %v217_v8 = vld [vmem:[#allocation0 + $0x2] sm:$0x1]   ;;  %v23_v9 = vld [vmem:[#allocation0] sm:$0x1]  }
   0xb   :  { %31 = vrot.lane.b32.xlu1 %v30_v2, %s293_s8  ;;  %v203_v4 = vld [vmem:[#allocation0 + $0x1] sm:$0x1]   ;;  %v37_v11 = vld [vmem:[#allocation0 + $0x2] sm:$0x1]   ;;  %v43_v12 = vld [vmem:[#allocation0] sm:$0x1]  }
   0xc   :  { %v205_v6 = vsel %vm204_vm0, %v203_v4, %v201_v3  ;;  %v215_v7 = vld [vmem:[#allocation0 + $0x1] sm:$0x1]   ;;  %v57_v14 = vld [vmem:[#allocation0 + $0x2] sm:$0x1]   ;;  %v63_v15 = vld [vmem:[#allocation0] sm:$0x1]  }
   0xd   :  { %v219_v10 = vsel %vm218_vm1, %v217_v8, %v215_v7  ;;  %v50_v13 = vld [vmem:[#allocation0 + $0x1] sm:$0x1]   ;;  %v77_v17 = vld [vmem:[#allocation0 + $0x2] sm:$0x1]   ;;  %v83_v18 = vld [vmem:[#allocation0] sm:$0x1]  }
   0xe   :  { %18 = vrot.lane.b32.xlu0 %v17_v5, %s294_s9  ;;  %v70_v16 = vld [vmem:[#allocation0 + $0x1] sm:$0x1]   ;;  %v97_v20 = vld [vmem:[#allocation0 + $0x2] sm:$0x1]   ;;  %v103_v21 = vld [vmem:[#allocation0] sm:$0x1]  }
   0xf   :  { %206 = vrot.lane.b32.xlu1 %v205_v6, %s295_s10  ;;  %v90_v19 = vld [vmem:[#allocation0 + $0x1] sm:$0x1]   ;;  %v117_v23 = vld [vmem:[#allocation0 + $0x2] sm:$0x1]   ;;  %v123_v24 = vld [vmem:[#allocation0] sm:$0x1]  }
  0x10   :  { %v110_v22 = vld [vmem:[#allocation0 + $0x1] sm:$0x1]   ;;  %s310_s25 = smov 74   ;;  %s311_s26 = smov 68   ;;  %v136_v26 = vld [vmem:[#allocation0] sm:$0x1]  }
  0x11   :  { %v130_v25 = vld [vmem:[#allocation0 + $0x1] sm:$0x1]   ;;  %s312_s27 = smov 66   ;;  %s313_s28 = smov 58   ;;  %v149_v28 = vld [vmem:[#allocation0] sm:$0x1]  }
  0x12   :  { %24 = vrot.lane.b32.xlu0 %v23_v9, %s296_s11  ;;  %v143_v27 = vld [vmem:[#allocation0 + $0x1] sm:$0x1]   ;;  %s314_s29 = smov 56   ;;  %s315_s30 = smov 48   ;;  %v162_v30 = vld [vmem:[#allocation0] sm:$0x1]  }
  0x13   :  { %220 = vrot.lane.b32.xlu1 %v219_v10, %s297_s12  ;;  %v156_v29 = vld [vmem:[#allocation0 + $0x1] sm:$0x1]   ;;  %v6_v31 = vld [vmem:[#allocation0] sm:$0x1]   ;;  %s316_s4 = smov 46   ;;  %s317_s5 = smov 38  }
  0x14   :  { %8 = vst.msk [vmem:[%s469_s1] sm:$0x1] %vm7_vm2, %v6_v31   ;;  %v169_v32 = vld [vmem:[#allocation0 + $0x1] sm:$0x1]   ;;  %v175_v33 = vld [vmem:[#allocation0] sm:$0x1]  }
  0x15   :  { %s318_s6 = smov 36   ;;  %s319_s7 = smov 28   ;;  %v182_v34 = vld [vmem:[#allocation0 + $0x1] sm:$0x1]   ;;  %v188_v35 = vld [vmem:[#allocation0] sm:$0x1]  }
  0x16   :  { %38 = vrot.lane.b32.xlu0 %v37_v11, %s298_s13  ;;  %s320_s0 = smov 26   ;;  %s321_s8 = smov 18   ;;  %v195_v36 = vld [vmem:[#allocation0 + $0x1] sm:$0x1]  }
  0x17   :  { %44 = vrot.lane.b32.xlu1 %v43_v12, %s299_s14  ;;  %s322_s9 = smov 16  }
  0x1a   :  { %51 = vrot.lane.b32.xlu0 %v50_v13, %s300_s15 }
  0x1b   :  { %58 = vrot.lane.b32.xlu1 %v57_v14, %s301_s16 }
  0x1e   :  { %64 = vrot.lane.b32.xlu0 %v63_v15, %s302_s17 }
  0x1f   :  { %71 = vrot.lane.b32.xlu1 %v70_v16, %s303_s18 }
  0x22   :  { %78 = vrot.lane.b32.xlu0 %v77_v17, %s304_s19 }
  0x23   :  { %84 = vrot.lane.b32.xlu1 %v83_v18, %s305_s20 }
  0x26   :  { %91 = vrot.lane.b32.xlu0 %v90_v19, %s306_s21 }
  0x27   :  { %98 = vrot.lane.b32.xlu1 %v97_v20, %s307_s22 }
  0x2a   :  { %104 = vrot.lane.b32.xlu0 %v103_v21, %s308_s23 }
  0x2b   :  { %111 = vrot.lane.b32.xlu1 %v110_v22, %s309_s24 }
  0x2e   :  { %118 = vrot.lane.b32.xlu0 %v117_v23, %s310_s25 }
  0x2f   :  { %124 = vrot.lane.b32.xlu1 %v123_v24, %s311_s26 }
  0x32   :  { %131 = vrot.lane.b32.xlu0 %v130_v25, %s312_s27 }
  0x33   :  { %137 = vrot.lane.b32.xlu1 %v136_v26, %s313_s28 }
  0x36   :  { %144 = vrot.lane.b32.xlu0 %v143_v27, %s314_s29 }
  0x37   :  { %150 = vrot.lane.b32.xlu1 %v149_v28, %s315_s30 }
  0x3a   :  { %157 = vrot.lane.b32.xlu0 %v156_v29, %s316_s4 }
  0x3b   :  { %163 = vrot.lane.b32.xlu1 %v162_v30, %s317_s5 }
  0x3e   :  { %170 = vrot.lane.b32.xlu0 %v169_v32, %s318_s6 }
  0x3f   :  { %176 = vrot.lane.b32.xlu1 %v175_v33, %s319_s7 }
  0x42   :  { %183 = vrot.lane.b32.xlu0 %v182_v34, %s320_s0 }
  0x43   :  { %189 = vrot.lane.b32.xlu1 %v188_v35, %s321_s8 }
  0x46   :  { %196 = vrot.lane.b32.xlu0 %v195_v36, %s322_s9 }
  0x7c   :  { %v12_v37 = vpop.permute.xlu0 %11  }
  0x7d   :  { %v32_v38 = vpop.permute.xlu1 %31   ;;  %228 = vst.msk [vmem:[%s469_s1 + $0xd] sm:$0x1] %vm7_vm2, %v12_v37  }
  0x7e   :  { %231 = vst.msk [vmem:[%s469_s1 + $0xe] sm:$0x1] %vm7_vm2, %v32_v38  }
  0x80   :  { %v19_v39 = vpop.permute.xlu0 %18  }
  0x81   :  { %v207_v40 = vpop.permute.xlu1 %206   ;;  %229 = vst.msk [vmem:[%s469_s1 + $0x1a] sm:$0x1] %vm7_vm2, %v19_v39  }
  0x82   :  { %257 = vst.msk [vmem:[%s469_s1 + $0xc] sm:$0x1] %vm208_vm3, %v207_v40  }
  0x83   :  { %258 = vst.msk [vmem:[%s469_s1 + $0xc] sm:$0x1] %vm211_vm4, %v207_v40  }
  0x84   :  { %v25_v41 = vpop.permute.xlu0 %24  }
  0x85   :  { %v221_v42 = vpop.permute.xlu1 %220   ;;  %230 = vst.msk [vmem:[%s469_s1 + $0x1] sm:$0x1] %vm7_vm2, %v25_v41  }
  0x86   :  { %259 = vst.msk [vmem:[%s469_s1 + $0x19] sm:$0x1] %vm222_vm5, %v221_v42  }
  0x87   :  { %260 = vst.msk [vmem:[%s469_s1 + $0x19] sm:$0x1] %vm225_vm6, %v221_v42  }
  0x88   :  { %v39_v43 = vpop.permute.xlu0 %38  }
  0x89   :  { %v45_v44 = vpop.permute.xlu1 %44   ;;  %232 = vst.msk [vmem:[%s469_s1 + $0x1b] sm:$0x1] %vm7_vm2, %v39_v43  }
  0x8a   :  { %233 = vst.msk [vmem:[%s469_s1 + $0x2] sm:$0x1] %vm7_vm2, %v45_v44  }
  0x8c   :  { %v52_v45 = vpop.permute.xlu0 %51  }
  0x8d   :  { %v59_v46 = vpop.permute.xlu1 %58   ;;  %234 = vst.msk [vmem:[%s469_s1 + $0xf] sm:$0x1] %vm7_vm2, %v52_v45  }
  0x8e   :  { %235 = vst.msk [vmem:[%s469_s1 + $0x1c] sm:$0x1] %vm7_vm2, %v59_v46  }
  0x90   :  { %v65_v47 = vpop.permute.xlu0 %64  }
  0x91   :  { %v72_v48 = vpop.permute.xlu1 %71   ;;  %236 = vst.msk [vmem:[%s469_s1 + $0x3] sm:$0x1] %vm7_vm2, %v65_v47  }
  0x92   :  { %237 = vst.msk [vmem:[%s469_s1 + $0x10] sm:$0x1] %vm7_vm2, %v72_v48  }
  0x94   :  { %v79_v49 = vpop.permute.xlu0 %78  }
  0x95   :  { %v85_v50 = vpop.permute.xlu1 %84   ;;  %238 = vst.msk [vmem:[%s469_s1 + $0x1d] sm:$0x1] %vm7_vm2, %v79_v49  }
  0x96   :  { %239 = vst.msk [vmem:[%s469_s1 + $0x4] sm:$0x1] %vm7_vm2, %v85_v50  }
  0x98   :  { %v92_v51 = vpop.permute.xlu0 %91  }
  0x99   :  { %v99_v52 = vpop.permute.xlu1 %98   ;;  %240 = vst.msk [vmem:[%s469_s1 + $0x11] sm:$0x1] %vm7_vm2, %v92_v51  }
  0x9a   :  { %241 = vst.msk [vmem:[%s469_s1 + $0x1e] sm:$0x1] %vm7_vm2, %v99_v52  }
  0x9c   :  { %v105_v53 = vpop.permute.xlu0 %104  }
  0x9d   :  { %v112_v54 = vpop.permute.xlu1 %111   ;;  %242 = vst.msk [vmem:[%s469_s1 + $0x5] sm:$0x1] %vm7_vm2, %v105_v53  }
  0x9e   :  { %243 = vst.msk [vmem:[%s469_s1 + $0x12] sm:$0x1] %vm7_vm2, %v112_v54  }
  0xa0   :  { %v119_v55 = vpop.permute.xlu0 %118  }
  0xa1   :  { %v125_v56 = vpop.permute.xlu1 %124   ;;  %244 = vst.msk [vmem:[%s469_s1 + $0x1f] sm:$0x1] %vm7_vm2, %v119_v55  }
  0xa2   :  { %245 = vst.msk [vmem:[%s469_s1 + $0x6] sm:$0x1] %vm7_vm2, %v125_v56  }
  0xa4   :  { %v132_v57 = vpop.permute.xlu0 %131  }
  0xa5   :  { %v138_v58 = vpop.permute.xlu1 %137   ;;  %246 = vst.msk [vmem:[%s469_s1 + $0x13] sm:$0x1] %vm7_vm2, %v132_v57  }
  0xa6   :  { %247 = vst.msk [vmem:[%s469_s1 + $0x7] sm:$0x1] %vm7_vm2, %v138_v58  }
  0xa8   :  { %v145_v59 = vpop.permute.xlu0 %144  }
  0xa9   :  { %v151_v60 = vpop.permute.xlu1 %150   ;;  %248 = vst.msk [vmem:[%s469_s1 + $0x14] sm:$0x1] %vm7_vm2, %v145_v59  }
  0xaa   :  { %249 = vst.msk [vmem:[%s469_s1 + $0x8] sm:$0x1] %vm7_vm2, %v151_v60  }
  0xac   :  { %v158_v61 = vpop.permute.xlu0 %157  }
  0xad   :  { %v164_v62 = vpop.permute.xlu1 %163   ;;  %250 = vst.msk [vmem:[%s469_s1 + $0x15] sm:$0x1] %vm7_vm2, %v158_v61  }
  0xae   :  { %251 = vst.msk [vmem:[%s469_s1 + $0x9] sm:$0x1] %vm7_vm2, %v164_v62  }
  0xb0   :  { %v171_v63 = vpop.permute.xlu0 %170  }
  0xb1   :  { %v177_v0 = vpop.permute.xlu1 %176   ;;  %252 = vst.msk [vmem:[%s469_s1 + $0x16] sm:$0x1] %vm7_vm2, %v171_v63  }
  0xb2   :  { %253 = vst.msk [vmem:[%s469_s1 + $0xa] sm:$0x1] %vm7_vm2, %v177_v0  }
  0xb4   :  { %v184_v1 = vpop.permute.xlu0 %183  }
  0xb5   :  { %v190_v2 = vpop.permute.xlu1 %189   ;;  %254 = vst.msk [vmem:[%s469_s1 + $0x17] sm:$0x1] %vm7_vm2, %v184_v1  }
  0xb6   :  { %255 = vst.msk [vmem:[%s469_s1 + $0xb] sm:$0x1] %vm7_vm2, %v190_v2  }
  0xb8   :  { %v197_v3 = vpop.permute.xlu0 %196  }
  0xb9   :  { %256 = vst.msk [vmem:[%s469_s1 + $0x18] sm:$0x1] %vm7_vm2, %v197_v3  }

// kernel: forward.4
= control target key start
LH: loop header
LB: loop body
LE: loop exit
PB: predicated region body
PF: predicated region fallthrough
CT: control target
= control target key end

     0   :  { %v30_v0 = vlaneseq  ;;  %v538_v6 = vmov 0.0   ;;  %s539_s23 = smov 127   ;;  %vm541_vm0 = vmmov 0   ;;  %v542_v10 = vmov 0   ;;  %s663_s0 = inlined_call_operand.vmem [shape: f32[1,384], index: 0, kind: input, shape index: {}]   ;;  %s664_s4 = inlined_call_operand.vmem [shape: f32[8,1], index: 4, kind: input, shape index: {}]   ;;  %s665_s2 = inlined_call_operand.vmem [shape: f32[8,3], index: 2, kind: input, shape index: {}]   ;;  %s666_s1 = inlined_call_operand.vmem [shape: f32[1,384], index: 1, kind: input, shape index: {}]   ;;  %s667_s5 = inlined_call_operand.<no memory space> [shape: f32[1,1], index: 5, kind: input, shape index: {}]   ;;  %s668_s3 = inlined_call_operand.vmem [shape: f32[1,24], index: 3, kind: input, shape index: {}]   ;;  %s669_s6 = inlined_call_operand.vmem [shape: f32[1,384], index: 6, kind: output, shape index: {}]  }
   0x1   :  { %v25_v2 = vld [vmem:[%s663_s0] sm:$0x7]  ;;  %501 = vmatprep.subr.mxu1 %v538_v6  ;;  %167 = vmatprep.mubr.f32.mxu0 %v538_v6  ;;  %s540_s0 = smov 1   ;;  %vm48_vm1 = vcmask 7168   ;;  %vm61_vm2 = vcmask 1039360   ;;  %vm76_vm3 = vcmask 1040384   ;;  %v11_v53 = vstv %s667_s5 }
   0x2   :  { %v582_v1 = vshrl.u32 %v30_v0, 7  ;;  %503 = vmatprep.mubr.msk.f32.mxu1 %vm541_vm0, %v538_v6  ;;  %531 = vset.pattern.permute.xlu0 %v542_v10  ;;  %v28_v11 = vld [vmem:[%s664_s4] sm:$0xff]  ;;  %vm80_vm4 = vcmask 1041408   ;;  %vm93_vm5 = vcmask 1042432   ;;  %vm89_vm6 = vcmask 23552   ;;  %vm490_vm7 = vmneg %vm48_vm1 }
   0x3   :  { %537 = vset.pattern.permute.xlu1 %v542_v10  ;;  %v27_v30 = vld [vmem:[%s665_s2] sm:$0xff]  ;;  %v543_v45 = vmov 0.0|0.0   ;;  %12 = vst [vmem:[#allocation2] sm:$0x1] %v11_v53  ;;  %vm544_vm8 = vmmov 1   ;;  %vm304_vm10 = vcmask 195584  }
   0x4   :  { %v36_v3 = vsub.s32 1, %v582_v1  ;;  %v589_v4 = vsub.s32 0, %v582_v1  ;;  %v40_v5 = vsub.s32 2, %v582_v1  ;;  %v26_v35 = vld [vmem:[%s666_s1] sm:$0x7]  ;;  %vm518_vm9 = vmpackc.low %vm544_vm8, %vm490_vm7  ;;  %vm478_vm11 = vcmp.lt.s32.totalorder %v30_v0, 384 }
   0x6   :  { %v37_v7 = vrot.slane %v25_v2, %v36_v3  ;;  %v33_v8 = vrot.slane %v25_v2, %v589_v4  ;;  %v41_v9 = vrot.slane %v25_v2, %v40_v5  ;;  %v251_v40 = vrot.slane %v26_v35, %v589_v4 }
   0x7   :  { %v255_v43 = vrot.slane %v26_v35, %v36_v3  ;;  %v259_v51 = vrot.slane %v26_v35, %v40_v5 }
   0x8   :  { %57 = vrot.lane.b32.xlu0 %v37_v7, %s539_s23  ;;  %42 = vrot.lane.b32.xlu1 %v33_v8, %s540_s0 }
   0xa   :  { %v267_v55 = vld [vmem:[#allocation2] sm:$0x1] }
   0xc   :  { %59 = vrot.lane.b32.xlu0 %v41_v9, %s539_s23  ;;  %44 = vrot.lane.b32.xlu1 %v37_v7, %s540_s0 }
  0x10   :  { %55 = vrot.lane.b32.xlu0 %v33_v8, %s539_s23  ;;  %46 = vrot.lane.b32.xlu1 %v41_v9, %s540_s0 }
  0x14   :  { %86 = vperm.xlu0 %531, %v28_v11  }
  0x7a   :  { %v58_v12 = vpop.permute.xlu0 %57  ;;  %v43_v13 = vpop.permute.xlu1 %42 }
  0x7b   :  { %v54_v21 = vsel %vm48_vm1, 0.0, %v43_v13 }
  0x7c   :  { %v77_v32 = vsel %vm76_vm3, %v54_v21, %v33_v8 }
  0x7e   :  { %v60_v14 = vpop.permute.xlu0 %59  ;;  %v45_v15 = vpop.permute.xlu1 %44 }
  0x7f   :  { %v63_v16 = vsel %vm61_vm2, %v58_v12, %v60_v14  ;;  %v49_v17 = vsel %vm48_vm1, %v43_v13, %v45_v15  ;;  %v65_v18 = vsel %vm61_vm2, %v60_v14, 0.0 }
  0x80   :  { %v71_v19 = vrot.slane %v63_v16, 6  ;;  %v78_v20 = vsel %vm76_vm3, %v49_v17, %v37_v7  ;;  %v72_v25 = vrot.slane %v65_v18, 6 }
  0x82   :  { %v56_v22 = vpop.permute.xlu0 %55  ;;  %v47_v23 = vpop.permute.xlu1 %46  ;;  %v82_v24 = vsel %vm80_vm4, %v78_v20, %v71_v19 }
  0x83   :  { %v62_v26 = vsel %vm61_vm2, %v56_v22, %v58_v12  ;;  %v50_v27 = vsel %vm48_vm1, %v45_v15, %v47_v23  ;;  %485 = vmatprep.subr.msk.mxu0 %vm93_vm5, %v82_v24  ;;  %v545_v12 = vmov 1966171168  }
  0x84   :  { %v70_v28 = vrot.slane %v62_v26, 6  ;;  %v79_v29 = vsel %vm76_vm3, %v50_v27, %v41_v9  ;;  %v266_v9 = vld [vmem:[%s668_s3] sm:$0x1]  ;;  %v454_v13 = vunpack.c.l.s4 %v545_v12 }
  0x85   :  { %v83_v31 = vsel %vm80_vm4, %v79_v29, %v72_v25 }
  0x86   :  { %502 = vmatpush3.msk.msra.mxu1 %vm93_vm5, %v83_v31  ;;  %v81_v33 = vsel %vm80_vm4, %v77_v32, %v70_v28  ;;  %v455_v15 = vunpack.c.0.s8 %v454_v13 }
  0x87   :  { %486 = vmatpush1.msk.msra.mxu0 %vm93_vm5, %v81_v33  ;;  %504 = vmatmul.mubr.msk.f32.vlgmr.msra.gmra.mrb[0].mxu1 %vm89_vm6, %v27_v30 }
  0x88   :  { %487 = vmatmul.mubr.msk.f32.vlgmr.msra.gmra.mrb[0].mxu0 %vm89_vm6, %v27_v30  ;;  %512 = vmatprep.mubr.msk.f32.mxu1 %vm541_vm0, %v538_v6  ;;  %v458_v20 = vsub.s32 %v455_v15, %v582_v1 }
  0x89   :  { %372 = vmatprep.mubr.f32.mxu0 %v538_v6  ;;  %520 = vmatprep.subr.bf16.mxu1 %v543_v45 }
  0x93   :  { %v87_v34 = vpop.permute.xlu0 %86 }
 0x15a   :  { %v240_v36 = vpop.f32.mrb[0].mxu1 }
 0x15b   :  { %v169_v37 = vpop.f32.mrb[0].mxu0  ;;  %v505_v38 = vpop.f32.mrb[1].mxu1  ;;  %v241_v47 = vadd.f32 %v240_v36, %v87_v34 }
 0x15c   :  { %v170_v39 = vadd.f32 %v169_v37, %v87_v34  ;;  %v171_v41 = vpop.f32.mrb[1].mxu0 }
 0x15d   :  { %v172_v42 = vadd.f32 %v171_v41, %v87_v34  ;;  %v246_v50 = vmax.f32 %v241_v47, 0.0 }
 0x15e   :  { %v244_v44 = vmax.f32 %v170_v39, 0.0 }
 0x15f   :  { %v245_v46 = vmax.f32 %v172_v42, 0.0  ;;  %v265_v54 = vmul.f32 %v259_v51, %v246_v50 }
 0x160   :  { %v263_v48 = vmul.f32 %v251_v40, %v244_v44 }
 0x161   :  { %v264_v49 = vmul.f32 %v255_v43, %v245_v46 }
 0x163   :  { %285 = vrot.lane.b32.xlu0 %v264_v49, %s539_s23  ;;  %v532_v52 = vpack.i.bf16 %v264_v49, %v263_v48 }
 0x165   :  { %533 = vrot.lane.b32.xlu1 %v532_v52, %s540_s0 }
 0x167   :  { %283 = vrot.lane.b32.xlu0 %v263_v48, %s539_s23 }
 0x169   :  { %275 = vrot.lane.b32.xlu1 %v265_v54, %s540_s0 }
 0x16d   :  { %287 = vrot.lane.b32.xlu1 %v265_v54, %s539_s23 }
 0x171   :  { %297 = vperm.xlu1 %537, %v267_v55  }
 0x1d5   :  { %v286_v57 = vpop.permute.xlu0 %285 }
 0x1d7   :  { %v534_v56 = vpop.permute.xlu1 %533 }
 0x1d8   :  { %v536_v58 = vunpack.i.h.bf16 %v534_v56  ;;  %v535_v59 = vunpack.i.l.bf16 %v534_v56 }
 0x1d9   :  { %v284_v5 = vpop.permute.xlu0 %283 }
 0x1da   :  { %v277_v60 = vsel %vm48_vm1, %v535_v59, %v536_v58  ;;  %v517_v63 = vpack.c.bf16 %v263_v48, %v535_v59  ;;  %v289_v10 = vsel %vm61_vm2, %v284_v5, %v286_v57 }
 0x1db   :  { %v276_v61 = vpop.permute.xlu1 %275  ;;  %v515_v62 = vpack.c.bf16 %v264_v49, %v277_v60 }
 0x1dc   :  { %v278_v2 = vsel %vm48_vm1, %v536_v58, %v276_v61 }
 0x1dd   :  { %v521_v3 = vpack.c.bf16 %v265_v54, %v278_v2  ;;  %516 = vmatprep.subr.bf16.mxu0 %v515_v62 }
 0x1de   :  { %519 = vmatpush1.bf16.msk.msra.mxu0 %vm518_vm9, %v517_v63 }
 0x1df   :  { %v288_v7 = vpop.permute.xlu1 %287  ;;  %522 = vmatpush3.bf16.msra.mxu1 %v521_v3 }
 0x1e0   :  { %v290_v8 = vsel %vm61_vm2, %v286_v57, %v288_v7  ;;  %510 = vmatprep.subr.mxu1 %v538_v6 }
 0x1e1   :  { %312 = vmatprep.subr.mxu0 %v290_v8 }
 0x1e2   :  { %313 = vmatpush1.msra.mxu0 %v289_v10 }
 0x1e3   :  { %492 = vmatmul.mubr.msk.f32.vlgmr.msra.gmra.mrb[2].mxu0 %vm304_vm10, %v266_v9  ;;  %511 = vmatpush3.msk.msra.mxu1 %vm61_vm2, %v288_v7 }
 0x1e4   :  { %513 = vmatmul.mubr.msk.f32.vlgmr.msra.gmra.mrb[2].mxu1 %vm304_vm10, %v266_v9 }
 0x1f0   :  { %v298_v11 = vpop.permute.xlu1 %297 }
 0x1f1   :  { %v303_v14 = vrot.slane %v298_v11, %v589_v4 }
 0x2b6   :  { %v374_v6 = vpop.f32.mrb[2].mxu0 }
 0x2b7   :  { %v375_v16 = vadd.f32 %v374_v6, %v303_v14  ;;  %v376_v17 = vpop.f32.mrb[3].mxu0  ;;  %v445_v18 = vpop.f32.mrb[2].mxu1 }
 0x2b8   :  { %v377_v19 = vadd.f32 %v376_v17, %v303_v14  ;;  %v446_v21 = vadd.f32 %v445_v18, %v303_v14  ;;  %v514_v22 = vpop.f32.mrb[3].mxu1 }
 0x2ba   :  { %v452_v23 = vcombine.low %v375_v16, %v377_v19  ;;  %v466_v25 = vrot.slane %v446_v21, %v458_v20 }
 0x2bc   :  { %v459_v24 = vrot.slane %v452_v23, %v458_v20 }
 0x2be   :  { %v467_v26 = vcombine.low %v459_v24, %v466_v25 }
 0x2c0   :  { %v474_v27 = vrot.slane %v467_v26, %v458_v20 }
 0x2c2   :  { %480 = vst.msk [vmem:[%s669_s6] sm:$0x7] %vm478_vm11, %v474_v27 }

// kernel: forward.5
= control target key start
LH: loop header
LB: loop body
LE: loop exit
PB: predicated region body
PF: predicated region fallthrough
CT: control target
= control target key end

     0   :  { %s674_s13 = smov 1   ;;  %vm69_vm0 = vcmask 392192   ;;  %s675_s16 = smov 127   ;;  %v676_v5 = vmov 0   ;;  %vm47_vm1 = vcmask 7168   ;;  %vm56_vm4 = vcmask 1039360   ;;  %s852_s0 = inlined_call_operand.vmem [shape: f32[16,128], index: 0, kind: input, shape index: {}]   ;;  %s853_s3 = inlined_call_operand.vmem [shape: f32[16,48], index: 3, kind: input, shape index: {}]   ;;  %s854_s5 = inlined_call_operand.vmem [shape: f32[16,1], index: 5, kind: input, shape index: {}]   ;;  %s855_s1 = inlined_call_operand.vmem [shape: f32[1,128], index: 1, kind: input, shape index: {}]   ;;  %s856_s6 = inlined_call_operand.vmem [shape: f32[16,1], index: 6, kind: input, shape index: {}]   ;;  %s857_s4 = inlined_call_operand.vmem [shape: f32[16,48], index: 4, kind: input, shape index: {}]   ;;  %s858_s8 = inlined_call_operand.vmem [shape: f32[5,1], index: 8, kind: input, shape index: {}]   ;;  %s859_s2 = inlined_call_operand.vmem [shape: f32[128,2], index: 2, kind: input, shape index: {}]   ;;  %s860_s7 = inlined_call_operand.vmem [shape: f32[5,16], index: 7, kind: input, shape index: {}]   ;;  %s861_s9 = inlined_call_operand.vmem [shape: f32[5,2], index: 9, kind: output, shape index: {}]  }
   0x1   :  { %v32_v0 = vld [vmem:[%s852_s0] sm:$0xff]  ;;  %v33_v1 = vld [vmem:[%s852_s0 + $0x8] sm:$0xff]  ;;  %662 = vset.pattern.permute.xlu1 %v676_v5  ;;  %673 = vset.pattern.permute.xlu0 %v676_v5  ;;  %vm452_vm2 = vmneg %vm47_vm1  ;;  %v677_v11 = vmov 0.0|0.0   ;;  %vm678_vm6 = vmmov 0   ;;  %vm372_vm7 = vcmask 130048   ;;  %vm446_vm8 = vcmask 12288  }
   0x2   :  { %v652_v2 = vpack.i.bf16 %v33_v1, %v32_v0  ;;  %v585_v3 = vpack.c.bf16 %v33_v1, %v32_v0  ;;  %v35_v4 = vld [vmem:[%s853_s3] sm:$0xff]  ;;  %v38_v7 = vld [vmem:[%s854_s5 + $0x8] sm:$0xff]  ;;  %vm748_vm3 = vmpackc.low %vm452_vm2, %vm452_vm2 }
   0x3   :  { %519 = vmatprep.mubr.msk.f32.mxu1 %vm69_vm0, %v35_v4  ;;  %v37_v6 = vld [vmem:[%s854_s5] sm:$0xff]  ;;  %vm756_vm5 = vmpackc.low %vm56_vm4, %vm56_vm4  ;;  %v36_v18 = vld [vmem:[%s853_s3 + $0x8] sm:$0xff] }
   0x4   :  { %653 = vrot.lane.b32.xlu0 %v652_v2, %s674_s13  ;;  %61 = vperm.xlu1 %662, %v37_v6   ;;  %v460_v24 = vld [vmem:[%s855_s1] ss:$0 sm:$0xff]  ;;  %v164_v32 = vld [vmem:[%s856_s6 + $0x8] sm:$0xff]  ;;  %v276_v38 = vld [vmem:[%s859_s2 + $0x10] sm:$0xff] }
   0x5   :  { %v161_v33 = vld [vmem:[%s857_s4] sm:$0xff]  ;;  %v275_v37 = vld [vmem:[%s859_s2 + $0x8] sm:$0xff]  ;;  %v277_v40 = vld [vmem:[%s859_s2 + $0x18] sm:$0xff] }
   0x6   :  { %v366_v34 = vld [vmem:[%s858_s8] sm:$0x1f]  ;;  %v615_v41 = vpack.c.bf16 %v277_v40, %v276_v38  ;;  %v279_v43 = vld [vmem:[%s859_s2 + $0x28] sm:$0xff]  ;;  %v280_v45 = vld [vmem:[%s859_s2 + $0x30] sm:$0xff] }
   0x7   :  { %v163_v35 = vld [vmem:[%s856_s6] sm:$0xff]  ;;  %v281_v46 = vld [vmem:[%s859_s2 + $0x38] sm:$0xff]  ;;  %v283_v49 = vld [vmem:[%s859_s2 + $0x48] sm:$0xff] }
   0x8   :  { %658 = vrot.lane.b32.xlu0 %v652_v2, %s675_s16  ;;  %66 = vperm.xlu1 %662, %v38_v7   ;;  %v274_v36 = vld [vmem:[%s859_s2] sm:$0xff]  ;;  %v623_v47 = vpack.c.bf16 %v281_v46, %v280_v45  ;;  %v284_v51 = vld [vmem:[%s859_s2 + $0x50] sm:$0xff]  ;;  %v285_v52 = vld [vmem:[%s859_s2 + $0x58] sm:$0xff] }
   0x9   :  { %v611_v39 = vpack.c.bf16 %v275_v37, %v274_v36  ;;  %v278_v42 = vld [vmem:[%s859_s2 + $0x20] sm:$0xff]  ;;  %v631_v53 = vpack.c.bf16 %v285_v52, %v284_v51  ;;  %v287_v55 = vld [vmem:[%s859_s2 + $0x68] sm:$0xff]  ;;  %v288_v2 = vld [vmem:[%s859_s2 + $0x70] sm:$0xff] }
   0xa   :  { %v619_v44 = vpack.c.bf16 %v279_v43, %v278_v42  ;;  %v282_v48 = vld [vmem:[%s859_s2 + $0x40] sm:$0xff]  ;;  %v162_v1 = vld [vmem:[%s857_s4 + $0x8] sm:$0xff] }
   0xb   :  { %612 = vmatprep.subr.bf16.mxu0 %v611_v39  ;;  %v627_v50 = vpack.c.bf16 %v283_v49, %v282_v48  ;;  %v286_v54 = vld [vmem:[%s859_s2 + $0x60] sm:$0xff] }
   0xc   :  { %614 = vmatpush3.bf16.msra.mxu0 %v611_v39  ;;  %v635_v56 = vpack.c.bf16 %v287_v55, %v286_v54 }
   0xd   :  { %616 = vmatprep.subr.bf16.mxu0 %v615_v41 }
  0x10   :  { %618 = vmatpush3.bf16.msra.mxu0 %v615_v41 }
  0x11   :  { %620 = vmatprep.subr.bf16.mxu0 %v619_v44 }
  0x14   :  { %622 = vmatpush3.bf16.msra.mxu0 %v619_v44 }
  0x15   :  { %624 = vmatprep.subr.bf16.mxu0 %v623_v47 }
  0x18   :  { %626 = vmatpush3.bf16.msra.mxu0 %v623_v47 }
  0x19   :  { %628 = vmatprep.subr.bf16.mxu0 %v627_v50 }
  0x1c   :  { %630 = vmatpush3.bf16.msra.mxu0 %v627_v50 }
  0x1d   :  { %632 = vmatprep.subr.bf16.mxu0 %v631_v53 }
  0x20   :  { %634 = vmatpush3.bf16.msra.mxu0 %v631_v53 }
  0x21   :  { %636 = vmatprep.subr.bf16.mxu0 %v635_v56 }
  0x24   :  { %638 = vmatpush3.bf16.msra.mxu0 %v635_v56 }
  0x76   :  { %v654_v8 = vpop.permute.xlu0 %653 }
  0x77   :  { %v656_v9 = vunpack.i.h.bf16 %v654_v8  ;;  %v655_v10 = vunpack.i.l.bf16 %v654_v8 }
  0x79   :  { %v579_v12 = vpack.c.bf16 %v656_v9, %v655_v10 }
  0x7a   :  { %v659_v13 = vpop.permute.xlu0 %658 }
  0x7b   :  { %581 = vmatprep.subr.msk.bf16.mxu1 %vm748_vm3, %v579_v12  ;;  %v661_v14 = vunpack.i.h.bf16 %v659_v13  ;;  %v660_v15 = vunpack.i.l.bf16 %v659_v13 }
  0x7c   :  { %584 = vmatpush3.bf16.msk.msra.mxu1 %vm748_vm3, %v579_v12  ;;  %v679_v12 = vmov 0.0  }
  0x7d   :  { %v589_v16 = vpack.c.bf16 %v661_v14, %v660_v15  ;;  %586 = vmatprep.subr.bf16.mxu1 %v585_v3 }
  0x80   :  { %588 = vmatpush3.bf16.msra.mxu1 %v585_v3  ;;  %v289_v3 = vld [vmem:[%s859_s2 + $0x78] sm:$0xff] }
  0x81   :  { %591 = vmatprep.subr.msk.bf16.mxu1 %vm756_vm5, %v589_v16  ;;  %v639_v4 = vpack.c.bf16 %v289_v3, %v288_v2 }
  0x83   :  { %v62_v19 = vpop.permute.xlu1 %61  ;;  %640 = vmatprep.subr.bf16.mxu0 %v639_v4 }
  0x84   :  { %594 = vmatpush3.bf16.msk.msra.mxu1 %vm756_vm5, %v589_v16  ;;  %642 = vmatpush3.bf16.msra.mxu0 %v639_v4  ;;  %v365_v16 = vld [vmem:[%s860_s7] sm:$0x1f] }
  0x87   :  { %520 = vmatmul.mubr.msk.f32.vlgmr.msra.gmra.mrb[0].mxu1 %vm69_vm0, %v36_v18  ;;  %v67_v20 = vpop.permute.xlu1 %66 }
  0x88   :  { %534 = vmatprep.mubr.msk.f32.mxu1 %vm69_vm0, %v161_v33 }
 0x15a   :  { %v521_v21 = vpop.f32.mrb[0].mxu1 }
 0x15b   :  { %v148_v22 = vadd.f32 %v521_v21, %v67_v20  ;;  %v142_v23 = vpop.f32.mrb[1].mxu1 }
 0x15c   :  { %v143_v25 = vadd.f32 %v142_v23, %v62_v19 }
 0x15d   :  { %v152_v26 = vmax.f32 %v148_v22, 0.0 }
 0x15e   :  { %v151_v27 = vmax.f32 %v143_v25, 0.0 }
 0x15f   :  { %v160_v28 = vmul.f32 %v460_v24, %v152_v26 }
 0x160   :  { %v159_v29 = vmul.f32 %v460_v24, %v151_v27 }
 0x162   :  { %v668_v30 = vpack.i.bf16 %v160_v28, %v159_v29  ;;  %v601_v31 = vpack.c.bf16 %v160_v28, %v159_v29 }
 0x164   :  { %669 = vrot.lane.b32.xlu1 %v668_v30, %s675_s16  ;;  %664 = vrot.lane.b32.xlu0 %v668_v30, %s674_s13 }
 0x168   :  { %190 = vperm.xlu1 %662, %v164_v32   ;;  %185 = vperm.xlu0 %673, %v163_v35  }
 0x16c   :  { %369 = vperm.xlu1 %662, %v366_v34  }
 0x1d6   :  { %v665_v57 = vpop.permute.xlu0 %664  ;;  %v670_v60 = vpop.permute.xlu1 %669 }
 0x1d7   :  { %v667_v58 = vunpack.i.h.bf16 %v665_v57  ;;  %v666_v59 = vunpack.i.l.bf16 %v665_v57  ;;  %v672_v62 = vunpack.i.h.bf16 %v670_v60  ;;  %v671_v63 = vunpack.i.l.bf16 %v670_v60 }
 0x1d9   :  { %v595_v61 = vpack.c.bf16 %v667_v58, %v666_v59  ;;  %v605_v0 = vpack.c.bf16 %v672_v62, %v671_v63 }
 0x1db   :  { %597 = vmatprep.subr.msk.bf16.mxu1 %vm748_vm3, %v595_v61 }
 0x1dc   :  { %600 = vmatpush3.bf16.msk.msra.mxu1 %vm748_vm3, %v595_v61 }
 0x1dd   :  { %602 = vmatprep.subr.bf16.mxu1 %v601_v31 }
 0x1e0   :  { %604 = vmatpush3.bf16.msra.mxu1 %v601_v31 }
 0x1e1   :  { %607 = vmatprep.subr.msk.bf16.mxu1 %vm756_vm5, %v605_v0 }
 0x1e4   :  { %610 = vmatpush3.bf16.msk.msra.mxu1 %vm756_vm5, %v605_v0 }
 0x1e5   :  { %643 = vmatprep.subr.bf16.mxu1 %v677_v11 }
 0x1e7   :  { %535 = vmatmul.mubr.msk.f32.vlgmr.msra.gmra.mrb[2].mxu1 %vm69_vm0, %v162_v1  ;;  %v186_v5 = vpop.permute.xlu0 %185  ;;  %v191_v8 = vpop.permute.xlu1 %190 }
 0x1e8   :  { %576 = vmatprep.mubr.msk.f32.mxu1 %vm678_vm6, %v679_v12 }
 0x1eb   :  { %v370_v17 = vpop.permute.xlu1 %369 }
 0x2ba   :  { %v536_v6 = vpop.f32.mrb[2].mxu1 }
 0x2bb   :  { %v265_v7 = vpop.f32.mrb[3].mxu1  ;;  %v271_v10 = vadd.f32 %v536_v6, %v191_v8 }
 0x2bc   :  { %v266_v9 = vadd.f32 %v265_v7, %v186_v5 }
 0x2be   :  { %569 = vmatprep.mubr.f32.mxu0 %v266_v9 }
 0x2bf   :  { %570 = vmatmul.mubr.f32.vlgmr.msra.gmra.mrb[0].mxu0 %v271_v10 }
 0x392   :  { %v571_v13 = vpop.f32.mrb[0].mxu0 }
 0x393   :  { %v356_v14 = vpop.f32.mrb[1].mxu0 }
 0x394   :  { %v644_v15 = vpack.c.bf16 %v571_v13, %v356_v14 }
 0x396   :  { %645 = vmatpush3.bf16.msra.mxu1 %v644_v15 }
 0x399   :  { %577 = vmatmul.mubr.msk.f32.vlgmr.msra.gmra.mrb[4].mxu1 %vm372_vm7, %v365_v16 }
 0x46c   :  { %v442_v18 = vpop.f32.mrb[4].mxu1 }
 0x46d   :  { %v443_v19 = vadd.f32 %v442_v18, %v370_v17  ;;  %v578_v20 = vpop.f32.mrb[5].mxu1 }
 0x46f   :  { %447 = vst.msk [vmem:[%s861_s9] sm:$0x1f] %vm446_vm8, %v443_v19 }

// kernel: squeeze.11
= control target key start
LH: loop header
LB: loop body
LE: loop exit
PB: predicated region body
PF: predicated region fallthrough
CT: control target
= control target key end

     0   :  { %vm203_vm0 = vcmask 1014784   ;;  %s291_s8 = smov 114   ;;  %vm216_vm1 = vcmask 1031168   ;;  %s292_s9 = smov 121   ;;  %vm7_vm2 = vcmask 72704   ;;  %vm207_vm3 = vcmask 31744   ;;  %s466_s0 = inlined_call_operand.vmem [shape: f32[288], index: 0, kind: input, shape index: {}]   ;;  %s467_s1 = inlined_call_operand.vmem [shape: f32[32,9], index: 1, kind: output, shape index: {}]  }
   0x1   :  { %v4_v0 = vld [vmem:[%s466_s0] sm:$0xf]  ;;  %s290_s0 = smov 123   ;;  %s293_s10 = smov 4   ;;  %vm210_vm4 = vcmask 72736   ;;  %vm220_vm5 = vcmask 15360  }
   0x2   :  { %5 = vst [vmem:[#allocation0] sm:$0xf] %v4_v0  ;;  %s294_s11 = smov 119   ;;  %s295_s12 = smov 2   ;;  %vm223_vm6 = vcmask 72720  }
   0x3   :  { %s296_s13 = smov 112   ;;  %s297_s14 = smov 110  }
   0x4   :  { %s298_s15 = smov 105   ;;  %s299_s16 = smov 103  }
   0x5   :  { %s300_s17 = smov 101   ;;  %s301_s18 = smov 94  }
   0x6   :  { %s302_s19 = smov 92   ;;  %s303_s20 = smov 85  }
   0x7   :  { %s304_s21 = smov 83   ;;  %s305_s22 = smov 76  }
   0x8   :  { %s306_s23 = smov 74   ;;  %s307_s24 = smov 67  }
   0x9   :  { %v10_v1 = vld [vmem:[#allocation0 + $0x2] sm:$0x1]   ;;  %v200_v3 = vld [vmem:[#allocation0 + $0x1] sm:$0x1]   ;;  %v213_v7 = vld [vmem:[#allocation0] sm:$0x1]  }
   0xa   :  { %v30_v2 = vld [vmem:[#allocation0 + $0x2] sm:$0x1]   ;;  %11 = vrot.lane.b32.xlu0 %v10_v1, %s290_s0  ;;  %v17_v5 = vld [vmem:[#allocation0 + $0x1] sm:$0x1]   ;;  %v23_v9 = vld [vmem:[#allocation0] sm:$0x1]  }
   0xb   :  { %31 = vrot.lane.b32.xlu1 %v30_v2, %s291_s8  ;;  %v202_v4 = vld [vmem:[#allocation0 + $0x2] sm:$0x1]   ;;  %v215_v8 = vld [vmem:[#allocation0 + $0x1] sm:$0x1]   ;;  %v43_v12 = vld [vmem:[#allocation0] sm:$0x1]  }
   0xc   :  { %v204_v6 = vsel %vm203_vm0, %v202_v4, %v200_v3  ;;  %v217_v10 = vsel %vm216_vm1, %v215_v8, %v213_v7  ;;  %v37_v11 = vld [vmem:[#allocation0 + $0x1] sm:$0x1]   ;;  %v50_v13 = vld [vmem:[#allocation0 + $0x2] sm:$0x1]   ;;  %v63_v15 = vld [vmem:[#allocation0] sm:$0x1]  }
   0xd   :  { %v57_v14 = vld [vmem:[#allocation0 + $0x1] sm:$0x1]   ;;  %v76_v17 = vld [vmem:[#allocation0] sm:$0x1]   ;;  %s308_s25 = smov 65   ;;  %s309_s26 = smov 58  }
   0xe   :  { %18 = vrot.lane.b32.xlu0 %v17_v5, %s292_s9  ;;  %v70_v16 = vld [vmem:[#allocation0 + $0x1] sm:$0x1]   ;;  %v89_v19 = vld [vmem:[#allocation0] sm:$0x1]   ;;  %s310_s27 = smov 56   ;;  %s311_s28 = smov 49  }
   0xf   :  { %205 = vrot.lane.b32.xlu1 %v204_v6, %s293_s10  ;;  %v83_v18 = vld [vmem:[#allocation0 + $0x1] sm:$0x1]   ;;  %v102_v21 = vld [vmem:[#allocation0] sm:$0x1]   ;;  %s312_s29 = smov 47   ;;  %s313_s30 = smov 40  }
  0x10   :  { %v96_v20 = vld [vmem:[#allocation0 + $0x1] sm:$0x1]   ;;  %v115_v23 = vld [vmem:[#allocation0] sm:$0x1]   ;;  %s314_s4 = smov 38   ;;  %s315_s5 = smov 31  }
  0x11   :  { %v109_v22 = vld [vmem:[#allocation0 + $0x1] sm:$0x1]   ;;  %v128_v25 = vld [vmem:[#allocation0] sm:$0x1]   ;;  %s316_s6 = smov 29   ;;  %s317_s7 = smov 22  }
  0x12   :  { %24 = vrot.lane.b32.xlu0 %v23_v9, %s294_s11  ;;  %v122_v24 = vld [vmem:[#allocation0 + $0x1] sm:$0x1]   ;;  %v141_v27 = vld [vmem:[#allocation0] sm:$0x1]   ;;  %s318_s0 = smov 20   ;;  %s319_s8 = smov 13  }
  0x13   :  { %218 = vrot.lane.b32.xlu1 %v217_v10, %s295_s12  ;;  %v135_v26 = vld [vmem:[#allocation0 + $0x1] sm:$0x1]   ;;  %v154_v29 = vld [vmem:[#allocation0] sm:$0x1]   ;;  %s320_s9 = smov 11  }
  0x14   :  { %v148_v28 = vld [vmem:[#allocation0 + $0x1] sm:$0x1]   ;;  %v6_v31 = vld [vmem:[#allocation0] sm:$0x1]  }
  0x15   :  { %v161_v30 = vld [vmem:[#allocation0 + $0x1] sm:$0x1]   ;;  %8 = vst.msk [vmem:[%s467_s1] sm:$0x1] %vm7_vm2, %v6_v31   ;;  %v167_v32 = vld [vmem:[#allocation0] sm:$0x1]  }
  0x16   :  { %38 = vrot.lane.b32.xlu0 %v37_v11, %s296_s13  ;;  %v174_v33 = vld [vmem:[#allocation0 + $0x1] sm:$0x1]   ;;  %v180_v34 = vld [vmem:[#allocation0] sm:$0x1]  }
  0x17   :  { %44 = vrot.lane.b32.xlu1 %v43_v12, %s297_s14  ;;  %v187_v35 = vld [vmem:[#allocation0 + $0x1] sm:$0x1]   ;;  %v193_v36 = vld [vmem:[#allocation0] sm:$0x1]  }
  0x1a   :  { %51 = vrot.lane.b32.xlu0 %v50_v13, %s298_s15 }
  0x1b   :  { %58 = vrot.lane.b32.xlu1 %v57_v14, %s299_s16 }
  0x1e   :  { %64 = vrot.lane.b32.xlu0 %v63_v15, %s300_s17 }
  0x1f   :  { %71 = vrot.lane.b32.xlu1 %v70_v16, %s301_s18 }
  0x22   :  { %77 = vrot.lane.b32.xlu0 %v76_v17, %s302_s19 }
  0x23   :  { %84 = vrot.lane.b32.xlu1 %v83_v18, %s303_s20 }
  0x26   :  { %90 = vrot.lane.b32.xlu0 %v89_v19, %s304_s21 }
  0x27   :  { %97 = vrot.lane.b32.xlu1 %v96_v20, %s305_s22 }
  0x2a   :  { %103 = vrot.lane.b32.xlu0 %v102_v21, %s306_s23 }
  0x2b   :  { %110 = vrot.lane.b32.xlu1 %v109_v22, %s307_s24 }
  0x2e   :  { %116 = vrot.lane.b32.xlu0 %v115_v23, %s308_s25 }
  0x2f   :  { %123 = vrot.lane.b32.xlu1 %v122_v24, %s309_s26 }
  0x32   :  { %129 = vrot.lane.b32.xlu0 %v128_v25, %s310_s27 }
  0x33   :  { %136 = vrot.lane.b32.xlu1 %v135_v26, %s311_s28 }
  0x36   :  { %142 = vrot.lane.b32.xlu0 %v141_v27, %s312_s29 }
  0x37   :  { %149 = vrot.lane.b32.xlu1 %v148_v28, %s313_s30 }
  0x3a   :  { %155 = vrot.lane.b32.xlu0 %v154_v29, %s314_s4 }
  0x3b   :  { %162 = vrot.lane.b32.xlu1 %v161_v30, %s315_s5 }
  0x3e   :  { %168 = vrot.lane.b32.xlu0 %v167_v32, %s316_s6 }
  0x3f   :  { %175 = vrot.lane.b32.xlu1 %v174_v33, %s317_s7 }
  0x42   :  { %181 = vrot.lane.b32.xlu0 %v180_v34, %s318_s0 }
  0x43   :  { %188 = vrot.lane.b32.xlu1 %v187_v35, %s319_s8 }
  0x46   :  { %194 = vrot.lane.b32.xlu0 %v193_v36, %s320_s9 }
  0x7c   :  { %v12_v37 = vpop.permute.xlu0 %11  }
  0x7d   :  { %v32_v38 = vpop.permute.xlu1 %31   ;;  %226 = vst.msk [vmem:[%s467_s1 + $0x1d] sm:$0x1] %vm7_vm2, %v12_v37  }
  0x7e   :  { %229 = vst.msk [vmem:[%s467_s1 + $0x1e] sm:$0x1] %vm7_vm2, %v32_v38  }
  0x80   :  { %v19_v39 = vpop.permute.xlu0 %18  }
  0x81   :  { %v206_v40 = vpop.permute.xlu1 %205   ;;  %227 = vst.msk [vmem:[%s467_s1 + $0xf] sm:$0x1] %vm7_vm2, %v19_v39  }
  0x82   :  { %255 = vst.msk [vmem:[%s467_s1 + $0x1c] sm:$0x1] %vm207_vm3, %v206_v40  }
  0x83   :  { %256 = vst.msk [vmem:[%s467_s1 + $0x1c] sm:$0x1] %vm210_vm4, %v206_v40  }
  0x84   :  { %v25_v41 = vpop.permute.xlu0 %24  }
  0x85   :  { %v219_v42 = vpop.permute.xlu1 %218   ;;  %228 = vst.msk [vmem:[%s467_s1 + $0x1] sm:$0x1] %vm7_vm2, %v25_v41  }
  0x86   :  { %257 = vst.msk [vmem:[%s467_s1 + $0xe] sm:$0x1] %vm220_vm5, %v219_v42  }
  0x87   :  { %258 = vst.msk [vmem:[%s467_s1 + $0xe] sm:$0x1] %vm223_vm6, %v219_v42  }
  0x88   :  { %v39_v43 = vpop.permute.xlu0 %38  }
  0x89   :  { %v45_v44 = vpop.permute.xlu1 %44   ;;  %230 = vst.msk [vmem:[%s467_s1 + $0x10] sm:$0x1] %vm7_vm2, %v39_v43  }
  0x8a   :  { %231 = vst.msk [vmem:[%s467_s1 + $0x2] sm:$0x1] %vm7_vm2, %v45_v44  }
  0x8c   :  { %v52_v45 = vpop.permute.xlu0 %51  }
  0x8d   :  { %v59_v46 = vpop.permute.xlu1 %58   ;;  %232 = vst.msk [vmem:[%s467_s1 + $0x1f] sm:$0x1] %vm7_vm2, %v52_v45  }
  0x8e   :  { %233 = vst.msk [vmem:[%s467_s1 + $0x11] sm:$0x1] %vm7_vm2, %v59_v46  }
  0x90   :  { %v65_v47 = vpop.permute.xlu0 %64  }
  0x91   :  { %v72_v48 = vpop.permute.xlu1 %71   ;;  %234 = vst.msk [vmem:[%s467_s1 + $0x3] sm:$0x1] %vm7_vm2, %v65_v47  }
  0x92   :  { %235 = vst.msk [vmem:[%s467_s1 + $0x12] sm:$0x1] %vm7_vm2, %v72_v48  }
  0x94   :  { %v78_v49 = vpop.permute.xlu0 %77  }
  0x95   :  { %v85_v50 = vpop.permute.xlu1 %84   ;;  %236 = vst.msk [vmem:[%s467_s1 + $0x4] sm:$0x1] %vm7_vm2, %v78_v49  }
  0x96   :  { %237 = vst.msk [vmem:[%s467_s1 + $0x13] sm:$0x1] %vm7_vm2, %v85_v50  }
  0x98   :  { %v91_v51 = vpop.permute.xlu0 %90  }
  0x99   :  { %v98_v52 = vpop.permute.xlu1 %97   ;;  %238 = vst.msk [vmem:[%s467_s1 + $0x5] sm:$0x1] %vm7_vm2, %v91_v51  }
  0x9a   :  { %239 = vst.msk [vmem:[%s467_s1 + $0x14] sm:$0x1] %vm7_vm2, %v98_v52  }
  0x9c   :  { %v104_v53 = vpop.permute.xlu0 %103  }
  0x9d   :  { %v111_v54 = vpop.permute.xlu1 %110   ;;  %240 = vst.msk [vmem:[%s467_s1 + $0x6] sm:$0x1] %vm7_vm2, %v104_v53  }
  0x9e   :  { %241 = vst.msk [vmem:[%s467_s1 + $0x15] sm:$0x1] %vm7_vm2, %v111_v54  }
  0xa0   :  { %v117_v55 = vpop.permute.xlu0 %116  }
  0xa1   :  { %v124_v56 = vpop.permute.xlu1 %123   ;;  %242 = vst.msk [vmem:[%s467_s1 + $0x7] sm:$0x1] %vm7_vm2, %v117_v55  }
  0xa2   :  { %243 = vst.msk [vmem:[%s467_s1 + $0x16] sm:$0x1] %vm7_vm2, %v124_v56  }
  0xa4   :  { %v130_v57 = vpop.permute.xlu0 %129  }
  0xa5   :  { %v137_v58 = vpop.permute.xlu1 %136   ;;  %244 = vst.msk [vmem:[%s467_s1 + $0x8] sm:$0x1] %vm7_vm2, %v130_v57  }
  0xa6   :  { %245 = vst.msk [vmem:[%s467_s1 + $0x17] sm:$0x1] %vm7_vm2, %v137_v58  }
  0xa8   :  { %v143_v59 = vpop.permute.xlu0 %142  }
  0xa9   :  { %v150_v60 = vpop.permute.xlu1 %149   ;;  %246 = vst.msk [vmem:[%s467_s1 + $0x9] sm:$0x1] %vm7_vm2, %v143_v59  }
  0xaa   :  { %247 = vst.msk [vmem:[%s467_s1 + $0x18] sm:$0x1] %vm7_vm2, %v150_v60  }
  0xac   :  { %v156_v61 = vpop.permute.xlu0 %155  }
  0xad   :  { %v163_v62 = vpop.permute.xlu1 %162   ;;  %248 = vst.msk [vmem:[%s467_s1 + $0xa] sm:$0x1] %vm7_vm2, %v156_v61  }
  0xae   :  { %249 = vst.msk [vmem:[%s467_s1 + $0x19] sm:$0x1] %vm7_vm2, %v163_v62  }
  0xb0   :  { %v169_v63 = vpop.permute.xlu0 %168  }
  0xb1   :  { %v176_v0 = vpop.permute.xlu1 %175   ;;  %250 = vst.msk [vmem:[%s467_s1 + $0xb] sm:$0x1] %vm7_vm2, %v169_v63  }
  0xb2   :  { %251 = vst.msk [vmem:[%s467_s1 + $0x1a] sm:$0x1] %vm7_vm2, %v176_v0  }
  0xb4   :  { %v182_v1 = vpop.permute.xlu0 %181  }
  0xb5   :  { %v189_v2 = vpop.permute.xlu1 %188   ;;  %252 = vst.msk [vmem:[%s467_s1 + $0xc] sm:$0x1] %vm7_vm2, %v182_v1  }
  0xb6   :  { %253 = vst.msk [vmem:[%s467_s1 + $0x1b] sm:$0x1] %vm7_vm2, %v189_v2  }
  0xb8   :  { %v195_v3 = vpop.permute.xlu0 %194  }
  0xb9   :  { %254 = vst.msk [vmem:[%s467_s1 + $0xd] sm:$0x1] %vm7_vm2, %v195_v3  }

// kernel: squeeze.12
= control target key start
LH: loop header
LB: loop body
LE: loop exit
PB: predicated region body
PF: predicated region fallthrough
CT: control target
= control target key end

     0   :  { %s276_s8 = smov 118   ;;  %vm202_vm0 = vcmask 1031168   ;;  %s277_s9 = smov 122   ;;  %vm7_vm1 = vcmask 48128   ;;  %vm206_vm2 = vcmask 15360   ;;  %vm209_vm3 = vcmask 48144   ;;  %s449_s0 = inlined_call_operand.vmem [shape: f32[192], index: 0, kind: input, shape index: {}]   ;;  %s450_s1 = inlined_call_operand.vmem [shape: f32[32,6], index: 1, kind: output, shape index: {}]  }
   0x1   :  { %v4_v0 = vld [vmem:[%s449_s0] sm:$0x3]  ;;  %s275_s0 = smov 124   ;;  %s278_s10 = smov 112  }
   0x2   :  { %5 = vst [vmem:[#allocation0] sm:$0x3] %v4_v0  ;;  %s279_s11 = smov 116   ;;  %s280_s12 = smov 2  }
   0x3   :  { %s281_s13 = smov 110   ;;  %s282_s14 = smov 106  }
   0x4   :  { %s283_s15 = smov 104   ;;  %s284_s16 = smov 100  }
   0x5   :  { %s285_s17 = smov 98   ;;  %s286_s18 = smov 94  }
   0x6   :  { %s287_s19 = smov 92   ;;  %s288_s20 = smov 88  }
   0x7   :  { %s289_s21 = smov 86   ;;  %s290_s22 = smov 82  }
   0x8   :  { %s291_s23 = smov 80   ;;  %s292_s24 = smov 76  }
   0x9   :  { %v10_v1 = vld [vmem:[#allocation0 + $0x1] sm:$0x1]   ;;  %v16_v3 = vld [vmem:[#allocation0] sm:$0x1]   ;;  %s293_s25 = smov 74   ;;  %s294_s26 = smov 70  }
   0xa   :  { %v23_v2 = vld [vmem:[#allocation0 + $0x1] sm:$0x1]   ;;  %11 = vrot.lane.b32.xlu0 %v10_v1, %s275_s0  ;;  %v199_v5 = vld [vmem:[#allocation0] sm:$0x1]   ;;  %s295_s27 = smov 68   ;;  %s296_s28 = smov 62  }
   0xb   :  { %24 = vrot.lane.b32.xlu1 %v23_v2, %s276_s8  ;;  %v36_v4 = vld [vmem:[#allocation0 + $0x1] sm:$0x1]   ;;  %v29_v7 = vld [vmem:[#allocation0] sm:$0x1]   ;;  %s297_s29 = smov 56   ;;  %s298_s30 = smov 50  }
   0xc   :  { %v201_v6 = vld [vmem:[#allocation0 + $0x1] sm:$0x1]   ;;  %v42_v9 = vld [vmem:[#allocation0] sm:$0x1]   ;;  %s299_s4 = smov 44   ;;  %s300_s5 = smov 38  }
   0xd   :  { %v203_v8 = vsel %vm202_vm0, %v201_v6, %v199_v5  ;;  %v49_v10 = vld [vmem:[#allocation0 + $0x1] sm:$0x1]   ;;  %v55_v11 = vld [vmem:[#allocation0] sm:$0x1]   ;;  %s301_s6 = smov 32   ;;  %s302_s7 = smov 26  }
   0xe   :  { %17 = vrot.lane.b32.xlu0 %v16_v3, %s277_s9  ;;  %v62_v12 = vld [vmem:[#allocation0 + $0x1] sm:$0x1]   ;;  %v68_v13 = vld [vmem:[#allocation0] sm:$0x1]   ;;  %s303_s0 = smov 20   ;;  %s304_s8 = smov 14  }
   0xf   :  { %37 = vrot.lane.b32.xlu1 %v36_v4, %s278_s10  ;;  %v75_v14 = vld [vmem:[#allocation0 + $0x1] sm:$0x1]   ;;  %v81_v15 = vld [vmem:[#allocation0] sm:$0x1]   ;;  %s305_s9 = smov 8  }
  0x10   :  { %v88_v16 = vld [vmem:[#allocation0 + $0x1] sm:$0x1]   ;;  %v94_v17 = vld [vmem:[#allocation0] sm:$0x1]  }
  0x11   :  { %v101_v18 = vld [vmem:[#allocation0 + $0x1] sm:$0x1]   ;;  %v107_v19 = vld [vmem:[#allocation0] sm:$0x1]  }
  0x12   :  { %30 = vrot.lane.b32.xlu0 %v29_v7, %s279_s11  ;;  %v114_v20 = vld [vmem:[#allocation0 + $0x1] sm:$0x1]   ;;  %v120_v21 = vld [vmem:[#allocation0] sm:$0x1]  }
  0x13   :  { %204 = vrot.lane.b32.xlu1 %v203_v8, %s280_s12  ;;  %v127_v22 = vld [vmem:[#allocation0 + $0x1] sm:$0x1]   ;;  %v133_v23 = vld [vmem:[#allocation0] sm:$0x1]  }
  0x14   :  { %v139_v24 = vld [vmem:[#allocation0] sm:$0x1]  }
  0x15   :  { %v145_v25 = vld [vmem:[#allocation0] sm:$0x1]  }
  0x16   :  { %43 = vrot.lane.b32.xlu0 %v42_v9, %s281_s13  ;;  %v151_v26 = vld [vmem:[#allocation0] sm:$0x1]  }
  0x17   :  { %50 = vrot.lane.b32.xlu1 %v49_v10, %s282_s14  ;;  %v157_v27 = vld [vmem:[#allocation0] sm:$0x1]  }
  0x18   :  { %v163_v28 = vld [vmem:[#allocation0] sm:$0x1]  }
  0x19   :  { %v6_v29 = vld [vmem:[#allocation0] sm:$0x1]  }
  0x1a   :  { %56 = vrot.lane.b32.xlu0 %v55_v11, %s283_s15  ;;  %8 = vst.msk [vmem:[%s450_s1] sm:$0x1] %vm7_vm1, %v6_v29   ;;  %v169_v30 = vld [vmem:[#allocation0] sm:$0x1]  }
  0x1b   :  { %63 = vrot.lane.b32.xlu1 %v62_v12, %s284_s16  ;;  %v175_v31 = vld [vmem:[#allocation0] sm:$0x1]  }
  0x1c   :  { %v181_v32 = vld [vmem:[#allocation0] sm:$0x1]  }
  0x1d   :  { %v187_v33 = vld [vmem:[#allocation0] sm:$0x1]  }
  0x1e   :  { %69 = vrot.lane.b32.xlu0 %v68_v13, %s285_s17  ;;  %v193_v34 = vld [vmem:[#allocation0] sm:$0x1]  }
  0x1f   :  { %76 = vrot.lane.b32.xlu1 %v75_v14, %s286_s18 }
  0x22   :  { %82 = vrot.lane.b32.xlu0 %v81_v15, %s287_s19 }
  0x23   :  { %89 = vrot.lane.b32.xlu1 %v88_v16, %s288_s20 }
  0x26   :  { %95 = vrot.lane.b32.xlu0 %v94_v17, %s289_s21 }
  0x27   :  { %102 = vrot.lane.b32.xlu1 %v101_v18, %s290_s22 }
  0x2a   :  { %108 = vrot.lane.b32.xlu0 %v107_v19, %s291_s23 }
  0x2b   :  { %115 = vrot.lane.b32.xlu1 %v114_v20, %s292_s24 }
  0x2e   :  { %121 = vrot.lane.b32.xlu0 %v120_v21, %s293_s25 }
  0x2f   :  { %128 = vrot.lane.b32.xlu1 %v127_v22, %s294_s26 }
  0x32   :  { %134 = vrot.lane.b32.xlu0 %v133_v23, %s295_s27 }
  0x33   :  { %140 = vrot.lane.b32.xlu1 %v139_v24, %s296_s28 }
  0x36   :  { %146 = vrot.lane.b32.xlu0 %v145_v25, %s297_s29 }
  0x37   :  { %152 = vrot.lane.b32.xlu1 %v151_v26, %s298_s30 }
  0x3a   :  { %158 = vrot.lane.b32.xlu0 %v157_v27, %s299_s4 }
  0x3b   :  { %164 = vrot.lane.b32.xlu1 %v163_v28, %s300_s5 }
  0x3e   :  { %170 = vrot.lane.b32.xlu0 %v169_v30, %s301_s6 }
  0x3f   :  { %176 = vrot.lane.b32.xlu1 %v175_v31, %s302_s7 }
  0x42   :  { %182 = vrot.lane.b32.xlu0 %v181_v32, %s303_s0 }
  0x43   :  { %188 = vrot.lane.b32.xlu1 %v187_v33, %s304_s8 }
  0x46   :  { %194 = vrot.lane.b32.xlu0 %v193_v34, %s305_s9 }
  0x7c   :  { %v12_v35 = vpop.permute.xlu0 %11  }
  0x7d   :  { %v25_v36 = vpop.permute.xlu1 %24   ;;  %212 = vst.msk [vmem:[%s450_s1 + $0x16] sm:$0x1] %vm7_vm1, %v12_v35  }
  0x7e   :  { %214 = vst.msk [vmem:[%s450_s1 + $0x17] sm:$0x1] %vm7_vm1, %v25_v36  }
  0x80   :  { %v18_v37 = vpop.permute.xlu0 %17  }
  0x81   :  { %v38_v38 = vpop.permute.xlu1 %37   ;;  %213 = vst.msk [vmem:[%s450_s1 + $0x1] sm:$0x1] %vm7_vm1, %v18_v37  }
  0x82   :  { %216 = vst.msk [vmem:[%s450_s1 + $0x18] sm:$0x1] %vm7_vm1, %v38_v38  }
  0x84   :  { %v31_v39 = vpop.permute.xlu0 %30  }
  0x85   :  { %v205_v40 = vpop.permute.xlu1 %204   ;;  %215 = vst.msk [vmem:[%s450_s1 + $0x2] sm:$0x1] %vm7_vm1, %v31_v39  }
  0x86   :  { %242 = vst.msk [vmem:[%s450_s1 + $0x15] sm:$0x1] %vm206_vm2, %v205_v40  }
  0x87   :  { %243 = vst.msk [vmem:[%s450_s1 + $0x15] sm:$0x1] %vm209_vm3, %v205_v40  }
  0x88   :  { %v44_v41 = vpop.permute.xlu0 %43  }
  0x89   :  { %v51_v42 = vpop.permute.xlu1 %50   ;;  %217 = vst.msk [vmem:[%s450_s1 + $0x3] sm:$0x1] %vm7_vm1, %v44_v41  }
  0x8a   :  { %218 = vst.msk [vmem:[%s450_s1 + $0x19] sm:$0x1] %vm7_vm1, %v51_v42  }
  0x8c   :  { %v57_v43 = vpop.permute.xlu0 %56  }
  0x8d   :  { %v64_v44 = vpop.permute.xlu1 %63   ;;  %219 = vst.msk [vmem:[%s450_s1 + $0x4] sm:$0x1] %vm7_vm1, %v57_v43  }
  0x8e   :  { %220 = vst.msk [vmem:[%s450_s1 + $0x1a] sm:$0x1] %vm7_vm1, %v64_v44  }
  0x90   :  { %v70_v45 = vpop.permute.xlu0 %69  }
  0x91   :  { %v77_v46 = vpop.permute.xlu1 %76   ;;  %221 = vst.msk [vmem:[%s450_s1 + $0x5] sm:$0x1] %vm7_vm1, %v70_v45  }
  0x92   :  { %222 = vst.msk [vmem:[%s450_s1 + $0x1b] sm:$0x1] %vm7_vm1, %v77_v46  }
  0x94   :  { %v83_v47 = vpop.permute.xlu0 %82  }
  0x95   :  { %v90_v48 = vpop.permute.xlu1 %89   ;;  %223 = vst.msk [vmem:[%s450_s1 + $0x6] sm:$0x1] %vm7_vm1, %v83_v47  }
  0x96   :  { %224 = vst.msk [vmem:[%s450_s1 + $0x1c] sm:$0x1] %vm7_vm1, %v90_v48  }
  0x98   :  { %v96_v49 = vpop.permute.xlu0 %95  }
  0x99   :  { %v103_v50 = vpop.permute.xlu1 %102   ;;  %225 = vst.msk [vmem:[%s450_s1 + $0x7] sm:$0x1] %vm7_vm1, %v96_v49  }
  0x9a   :  { %226 = vst.msk [vmem:[%s450_s1 + $0x1d] sm:$0x1] %vm7_vm1, %v103_v50  }
  0x9c   :  { %v109_v51 = vpop.permute.xlu0 %108  }
  0x9d   :  { %v116_v52 = vpop.permute.xlu1 %115   ;;  %227 = vst.msk [vmem:[%s450_s1 + $0x8] sm:$0x1] %vm7_vm1, %v109_v51  }
  0x9e   :  { %228 = vst.msk [vmem:[%s450_s1 + $0x1e] sm:$0x1] %vm7_vm1, %v116_v52  }
  0xa0   :  { %v122_v53 = vpop.permute.xlu0 %121  }
  0xa1   :  { %v129_v54 = vpop.permute.xlu1 %128   ;;  %229 = vst.msk [vmem:[%s450_s1 + $0x9] sm:$0x1] %vm7_vm1, %v122_v53  }
  0xa2   :  { %230 = vst.msk [vmem:[%s450_s1 + $0x1f] sm:$0x1] %vm7_vm1, %v129_v54  }
  0xa4   :  { %v135_v55 = vpop.permute.xlu0 %134  }
  0xa5   :  { %v141_v56 = vpop.permute.xlu1 %140   ;;  %231 = vst.msk [vmem:[%s450_s1 + $0xa] sm:$0x1] %vm7_vm1, %v135_v55  }
  0xa6   :  { %232 = vst.msk [vmem:[%s450_s1 + $0xb] sm:$0x1] %vm7_vm1, %v141_v56  }
  0xa8   :  { %v147_v57 = vpop.permute.xlu0 %146  }
  0xa9   :  { %v153_v58 = vpop.permute.xlu1 %152   ;;  %233 = vst.msk [vmem:[%s450_s1 + $0xc] sm:$0x1] %vm7_vm1, %v147_v57  }
  0xaa   :  { %234 = vst.msk [vmem:[%s450_s1 + $0xd] sm:$0x1] %vm7_vm1, %v153_v58  }
  0xac   :  { %v159_v59 = vpop.permute.xlu0 %158  }
  0xad   :  { %v165_v60 = vpop.permute.xlu1 %164   ;;  %235 = vst.msk [vmem:[%s450_s1 + $0xe] sm:$0x1] %vm7_vm1, %v159_v59  }
  0xae   :  { %236 = vst.msk [vmem:[%s450_s1 + $0xf] sm:$0x1] %vm7_vm1, %v165_v60  }
  0xb0   :  { %v171_v61 = vpop.permute.xlu0 %170  }
  0xb1   :  { %v177_v62 = vpop.permute.xlu1 %176   ;;  %237 = vst.msk [vmem:[%s450_s1 + $0x10] sm:$0x1] %vm7_vm1, %v171_v61  }
  0xb2   :  { %238 = vst.msk [vmem:[%s450_s1 + $0x11] sm:$0x1] %vm7_vm1, %v177_v62  }
  0xb4   :  { %v183_v63 = vpop.permute.xlu0 %182  }
  0xb5   :  { %v189_v0 = vpop.permute.xlu1 %188   ;;  %239 = vst.msk [vmem:[%s450_s1 + $0x12] sm:$0x1] %vm7_vm1, %v183_v63  }
  0xb6   :  { %240 = vst.msk [vmem:[%s450_s1 + $0x13] sm:$0x1] %vm7_vm1, %v189_v0  }
  0xb8   :  { %v195_v1 = vpop.permute.xlu0 %194  }
  0xb9   :  { %241 = vst.msk [vmem:[%s450_s1 + $0x14] sm:$0x1] %vm7_vm1, %v195_v1  }

// kernel: forward.6
= control target key start
LH: loop header
LB: loop body
LE: loop exit
PB: predicated region body
PF: predicated region fallthrough
CT: control target
= control target key end

     0   :  { %s1370_s15 = smov 0   ;;  %s1480_s0 = inlined_call_operand.vmem [shape: f32[2,16,16], index: 0, kind: input, shape index: {}]   ;;  %s1481_s1 = inlined_call_operand.vmem [shape: f32[2,1,16], index: 1, kind: input, shape index: {}]   ;;  %s1482_s2 = inlined_call_operand.vmem [shape: f32[2,1,16], index: 2, kind: input, shape index: {}]   ;;  %s1483_s3 = inlined_call_operand.vmem [shape: f32[2,7,16], index: 3, kind: output, shape index: {0}]   ;;  %s1484_s4 = inlined_call_operand.vmem [shape: f32[2,4,16], index: 4, kind: output, shape index: {1}]  }
   0x1 LB: > { %s1157_s16 = sadd.s32 4294967295, %s1340_s15   ;;  %p1161_p0 = scmp.ge.s32.totalorder %s1340_s15, 1  ;;  %s1340_s15 = sphi %s1370_s15, %s15_s15  }
   0x2   : > { %p181_p1 = scmp.lt.s32.totalorder %s1340_s15, 3 }
   0x4   : > { %p182_p2 = pnand %p1161_p0, %p181_p1 }
   0x5   : > { %p216_p3 = scmp.lt.s32.totalorder (!%p182_p2), %s1157_s16, 1  ;;  %v1342_v0 = vmov (!%p182_p2), 0.0|0.0   ;;  %vm1343_vm0 = vmmov (!%p182_p2), 0   ;;  %v1344_v1 = vmov (!%p182_p2), 0.0   ;;  %vm238_vm1 = vcmask (!%p182_p2), 130048  }
   0x6   : > { %185 = sbr.rel (%p182_p2) target bundleno = 1935 (0x78f), region = 32  ;;  %1290 = vmatprep.subr.bf16.mxu0 (!%p182_p2), %v1342_v0  ;;  %1217 = vmatprep.mubr.msk.f32.mxu0 (!%p182_p2), %vm1343_vm0, %v1344_v1  ;;  %vm312_vm2 = vcmask (!%p182_p2), 122880  }
   0x7   : > { %1293 = vmatprep.subr.bf16.mxu1 (!%p182_p2), %v1342_v0  ;;  %1224 = vmatprep.mubr.msk.f32.mxu1 (!%p182_p2), %vm1343_vm0, %v1344_v1 }
   0xd   : > { %s1486_s16 = smov (!%p216_p3, %s1157_s16), 1 }
   0xe   : > { %s1179_s17 = sshll.u32 %s1486_s16, 4  ;;  %s223_s23 = scalar_lea.vmem %s1481_s1, %s1486_s16 }
   0xf   : > { %s220_s20 = scalar_lea.vmem %s1480_s0, %s1179_s17  ;;  %v237_v5 = vld [vmem:[%s223_s23] sm:$0x1]  ;;  %s1164_s24 = sshll.u32 %s1486_s16, 3 }
  0x10   : > { %v235_v2 = vld [vmem:[%s220_s20] sm:$0xff]  ;;  %v236_v3 = vld [vmem:[%s220_s20 + $0x8] sm:$0xff]  ;;  %s1409_s27 = scalar_lea.vmem %s1483_s3, %s1164_s24  ;;  %s226_s30 = scalar_lea.vmem %s1482_s2, %s1486_s16 }
  0x11   : > { %v1394_v4 = vpack.c.bf16 %v236_v3, %v235_v2  ;;  %v758_v16 = vld [vmem:[%s226_s30] sm:$0x1]  ;;  %s1165_s5 = sshll.u32 %s1486_s16, 2 }
  0x12   : > { %s234_s8 = scalar_lea.vmem %s1484_s4, %s1165_s5 }
  0x13   : > { %1292 = vmatpush3.bf16.msra.mxu0 %v1394_v4  ;;  %1295 = vmatpush3.bf16.msra.mxu1 %v1394_v4 }
  0x14   : > { %1296 = vmatprep.subr.bf16.mxu0 %v1342_v0  ;;  %1299 = vmatprep.subr.bf16.mxu1 %v1342_v0 }
  0x16   : > { %1218 = vmatmul.mubr.msk.f32.vlgmr.msra.gmra.mrb[0].mxu0 %vm238_vm1, %v237_v5 }
  0x17   : > { %1298 = vmatpush3.bf16.msra.mxu0 %v1394_v4  ;;  %1231 = vmatprep.mubr.msk.f32.mxu0 %vm1343_vm0, %v1344_v1 }
  0x18   : > { %1302 = vmatprep.subr.bf16.mxu0 %v1342_v0 }
  0xe9   : > { %v308_v6 = vpop.f32.mrb[0].mxu0 }
  0xea   : > { %313 = vst.msk [vmem:[%s1409_s27] sm:$0x1] %vm312_vm2, %v308_v6  ;;  %v1219_v7 = vpop.f32.mrb[1].mxu0  ;;  %1225 = vmatmul.mubr.msk.f32.vlgmr.msra.gmra.mrb[0].mxu1 %vm238_vm1, %v308_v6 }
  0xeb   : > { %1301 = vmatpush3.bf16.msra.mxu1 %v1394_v4  ;;  %1238 = vmatprep.mubr.msk.f32.mxu1 %vm1343_vm0, %v1344_v1 }
  0xec   : > { %1305 = vmatprep.subr.bf16.mxu1 %v1342_v0 }
 0x1bd   : > { %v383_v8 = vpop.f32.mrb[0].mxu1 }
 0x1be   : > { %387 = vst.msk [vmem:[%s1409_s27 + $0x1] sm:$0x1] %vm312_vm2, %v383_v8  ;;  %v1226_v9 = vpop.f32.mrb[1].mxu1  ;;  %1232 = vmatmul.mubr.msk.f32.vlgmr.msra.gmra.mrb[2].mxu0 %vm238_vm1, %v383_v8 }
 0x1bf   : > { %1304 = vmatpush3.bf16.msra.mxu0 %v1394_v4  ;;  %1245 = vmatprep.mubr.msk.f32.mxu0 %vm1343_vm0, %v1344_v1 }
 0x1c0   : > { %1308 = vmatprep.subr.bf16.mxu0 %v1342_v0 }
 0x291   : > { %v457_v10 = vpop.f32.mrb[2].mxu0 }
 0x292   : > { %461 = vst.msk [vmem:[%s1409_s27 + $0x2] sm:$0x1] %vm312_vm2, %v457_v10  ;;  %v1233_v11 = vpop.f32.mrb[3].mxu0  ;;  %1239 = vmatmul.mubr.msk.f32.vlgmr.msra.gmra.mrb[2].mxu1 %vm238_vm1, %v457_v10 }
 0x293   : > { %1307 = vmatpush3.bf16.msra.mxu1 %v1394_v4  ;;  %1252 = vmatprep.mubr.msk.f32.mxu1 %vm1343_vm0, %v1344_v1 }
 0x294   : > { %1311 = vmatprep.subr.bf16.mxu1 %v1342_v0 }
 0x365   : > { %v531_v12 = vpop.f32.mrb[2].mxu1 }
 0x366   : > { %535 = vst.msk [vmem:[%s1409_s27 + $0x3] sm:$0x1] %vm312_vm2, %v531_v12  ;;  %v1240_v13 = vpop.f32.mrb[3].mxu1  ;;  %1246 = vmatmul.mubr.msk.f32.vlgmr.msra.gmra.mrb[4].mxu0 %vm238_vm1, %v531_v12 }
 0x367   : > { %1310 = vmatpush3.bf16.msra.mxu0 %v1394_v4  ;;  %1259 = vmatprep.mubr.msk.f32.mxu0 %vm1343_vm0, %v1344_v1 }
 0x368   : > { %1314 = vmatprep.subr.bf16.mxu0 %v1342_v0 }
 0x439   : > { %v605_v14 = vpop.f32.mrb[4].mxu0 }
 0x43a   : > { %609 = vst.msk [vmem:[%s1409_s27 + $0x4] sm:$0x1] %vm312_vm2, %v605_v14  ;;  %v1247_v15 = vpop.f32.mrb[5].mxu0  ;;  %1253 = vmatmul.mubr.msk.f32.vlgmr.msra.gmra.mrb[4].mxu1 %vm238_vm1, %v605_v14 }
 0x43b   : > { %1313 = vmatpush3.bf16.msra.mxu1 %v1394_v4  ;;  %1266 = vmatprep.mubr.msk.f32.mxu1 %vm1343_vm0, %v1344_v1 }
 0x43c   : > { %1317 = vmatprep.subr.bf16.mxu1 %v1342_v0 }
 0x43e   : > { %1267 = vmatmul.mubr.msk.f32.vlgmr.msra.gmra.mrb[6].mxu1 %vm238_vm1, %v758_v16 }
 0x43f   : > { %1319 = vmatpush3.bf16.msra.mxu1 %v1394_v4  ;;  %1280 = vmatprep.mubr.msk.f32.mxu1 %vm1343_vm0, %v1344_v1 }
 0x50d   : > { %v679_v17 = vpop.f32.mrb[4].mxu1 }
 0x50e   : > { %683 = vst.msk [vmem:[%s1409_s27 + $0x5] sm:$0x1] %vm312_vm2, %v679_v17  ;;  %v1254_v18 = vpop.f32.mrb[5].mxu1  ;;  %1260 = vmatmul.mubr.msk.f32.vlgmr.msra.gmra.mrb[6].mxu0 %vm238_vm1, %v679_v17 }
 0x50f   : > { %1316 = vmatpush3.bf16.msra.mxu0 %v1394_v4  ;;  %1273 = vmatprep.mubr.msk.f32.mxu0 %vm1343_vm0, %v1344_v1 }
 0x510   : > { %1320 = vmatprep.subr.bf16.mxu0 %v1342_v0 }
 0x511   : > { %v828_v19 = vpop.f32.mrb[6].mxu1 }
 0x512   : > { %832 = vst.msk [vmem:[%s234_s8] sm:$0x1] %vm312_vm2, %v828_v19  ;;  %v1268_v20 = vpop.f32.mrb[7].mxu1  ;;  %1274 = vmatmul.mubr.msk.f32.vlgmr.msra.gmra.mrb[8].mxu0 %vm238_vm1, %v828_v19 }
 0x513   : > { %1322 = vmatpush3.bf16.msra.mxu0 %v1394_v4  ;;  %1287 = vmatprep.mubr.msk.f32.mxu0 %vm1343_vm0, %v1344_v1 }
 0x5e1   : > { %v753_v21 = vpop.f32.mrb[6].mxu0 }
 0x5e2   : > { %757 = vst.msk [vmem:[%s1409_s27 + $0x6] sm:$0x1] %vm312_vm2, %v753_v21  ;;  %v1261_v22 = vpop.f32.mrb[7].mxu0 }
 0x5e5   : > { %v902_v23 = vpop.f32.mrb[8].mxu0 }
 0x5e6   : > { %906 = vst.msk [vmem:[%s234_s8 + $0x1] sm:$0x1] %vm312_vm2, %v902_v23  ;;  %v1275_v24 = vpop.f32.mrb[9].mxu0  ;;  %1281 = vmatmul.mubr.msk.f32.vlgmr.msra.gmra.mrb[8].mxu1 %vm238_vm1, %v902_v23 }
 0x6b9   : > { %v976_v25 = vpop.f32.mrb[8].mxu1 }
 0x6ba   : > { %980 = vst.msk [vmem:[%s234_s8 + $0x2] sm:$0x1] %vm312_vm2, %v976_v25  ;;  %v1282_v26 = vpop.f32.mrb[9].mxu1  ;;  %1288 = vmatmul.mubr.msk.f32.vlgmr.msra.gmra.mrb[10].mxu0 %vm238_vm1, %v976_v25 }
 0x78d   : > { %v1050_v27 = vpop.f32.mrb[10].mxu0 }
 0x78e   : > { %1054 = vst.msk [vmem:[%s234_s8 + $0x3] sm:$0x1] %vm312_vm2, %v1050_v27  ;;  %v1289_v28 = vpop.f32.mrb[11].mxu0 }
 0x78f PF: > { %s15_s15 = sadd.s32 1, %s1340_s15  }
 0x790   : > { %p12_p4 = scmp.ge.s32.totalorder %s15_s15, 4  }
 0x792   :  { %14 = sbr.rel (!%p12_p4) target bundleno = 1 (0x1), region = 80 }

// kernel: forward.7
= control target key start
LH: loop header
LB: loop body
LE: loop exit
PB: predicated region body
PF: predicated region fallthrough
CT: control target
= control target key end

     0   :  { %v30_v0 = vlaneseq  ;;  %v1031_v6 = vmov 0.0   ;;  %s1032_s23 = smov 2   ;;  %s1033_s24 = smov 1   ;;  %v1034_v17 = vmov 0   ;;  %vm101_vm0 = vcmask 7168   ;;  %s1287_s0 = inlined_call_operand.vmem [shape: f32[1,896], index: 0, kind: input, shape index: {}]   ;;  %s1288_s4 = inlined_call_operand.vmem [shape: f32[8,1], index: 4, kind: input, shape index: {}]   ;;  %s1289_s2 = inlined_call_operand.vmem [shape: f32[8,3], index: 2, kind: input, shape index: {}]   ;;  %s1290_s5 = inlined_call_operand.<no memory space> [shape: f32[1,1], index: 5, kind: input, shape index: {}]   ;;  %s1291_s1 = inlined_call_operand.vmem [shape: f32[1,896], index: 1, kind: input, shape index: {}]   ;;  %s1292_s3 = inlined_call_operand.vmem [shape: f32[1,24], index: 3, kind: input, shape index: {}]   ;;  %s1293_s6 = inlined_call_operand.vmem [shape: f32[1,896], index: 6, kind: output, shape index: {}]  }
   0x1   :  { %v25_v2 = vld [vmem:[%s1287_s0] sm:$0xff]  ;;  %243 = vmatprep.mubr.f32.mxu0 %v1031_v6  ;;  %314 = vmatprep.mubr.f32.mxu1 %v1031_v6  ;;  %vm72_vm1 = vcmask 15360   ;;  %vm132_vm2 = vcmask 1040384   ;;  %vm140_vm3 = vcmask 1041408   ;;  %vm157_vm4 = vcmask 1042432   ;;  %vm1243_vm8 = vmneg %vm101_vm0 }
   0x2   :  { %v1074_v1 = vshrl.u32 %v30_v0, 7  ;;  %1000 = vset.pattern.permute.xlu0 %v1034_v17  ;;  %v28_v19 = vld [vmem:[%s1288_s4] sm:$0xff]  ;;  %vm153_vm5 = vcmask 23552   ;;  %vm1035_vm6 = vmmov 0   ;;  %vm1238_vm7 = vmneg %vm72_vm1  ;;  %vm586_vm10 = vcmask 195584  }
   0x3   :  { %v27_v37 = vld [vmem:[%s1289_s2] sm:$0xff]  ;;  %vm980_vm9 = vmpackc.low %vm1243_vm8, %vm1238_vm7  ;;  %vm931_vm11 = vcmp.lt.s32.totalorder %v30_v0, 896 }
   0x4   :  { %v1080_v3 = vsub.s32 0, %v1074_v1  ;;  %v36_v4 = vsub.s32 1, %v1074_v1  ;;  %v44_v8 = vsub.s32 3, %v1074_v1  ;;  %v40_v9 = vsub.s32 2, %v1074_v1  ;;  %v26_v17 = vld [vmem:[%s1291_s1] sm:$0xff] }
   0x5   :  { %v52_v12 = vsub.s32 5, %v1074_v1  ;;  %v48_v13 = vsub.s32 4, %v1074_v1  ;;  %v56_v16 = vsub.s32 6, %v1074_v1 }
   0x6   :  { %v1084_v5 = vrot.slane %v25_v2, %v1080_v3  ;;  %v37_v7 = vrot.slane %v25_v2, %v36_v4  ;;  %v45_v10 = vrot.slane %v25_v2, %v44_v8  ;;  %v41_v11 = vrot.slane %v25_v2, %v40_v9 }
   0x7   :  { %v1110_v14 = vrot.slane %v25_v2, %v52_v12  ;;  %v1114_v15 = vrot.slane %v25_v2, %v48_v13  ;;  %v1127_v18 = vrot.slane %v25_v2, %v56_v16 }
   0x8   :  { %58 = vrot.lane.b32.xlu1 %v1084_v5, %s1032_s23  ;;  %87 = vrot.lane.b32.xlu0 %v1084_v5, %s1033_s24 }
   0xc   :  { %60 = vrot.lane.b32.xlu1 %v37_v7, %s1032_s23  ;;  %89 = vrot.lane.b32.xlu0 %v37_v7, %s1033_s24 }
  0x10   :  { %93 = vrot.lane.b32.xlu1 %v45_v10, %s1033_s24  ;;  %91 = vrot.lane.b32.xlu0 %v41_v11, %s1033_s24 }
  0x14   :  { %64 = vrot.lane.b32.xlu1 %v45_v10, %s1032_s23  ;;  %62 = vrot.lane.b32.xlu0 %v41_v11, %s1032_s23 }
  0x18   :  { %97 = vrot.lane.b32.xlu1 %v1110_v14, %s1033_s24  ;;  %95 = vrot.lane.b32.xlu0 %v1114_v15, %s1033_s24 }
  0x1c   :  { %68 = vrot.lane.b32.xlu1 %v1110_v14, %s1032_s23  ;;  %66 = vrot.lane.b32.xlu0 %v1114_v15, %s1032_s23 }
  0x20   :  { %70 = vrot.lane.b32.xlu1 %v1127_v18, %s1032_s23  ;;  %99 = vrot.lane.b32.xlu0 %v1127_v18, %s1033_s24 }
  0x24   :  { %150 = vperm.xlu0 %1000, %v28_v19  }
  0x7a   :  { %v59_v20 = vpop.permute.xlu1 %58  ;;  %v88_v21 = vpop.permute.xlu0 %87 }
  0x7b   :  { %v109_v22 = vsel %vm101_vm0, 0.0, %v88_v21  ;;  %v86_v27 = vsel %vm72_vm1, 0.0, %v59_v20 }
  0x7c   :  { %v111_v23 = vrot.slane %v109_v22, 7 }
  0x7e   :  { %v61_v24 = vpop.permute.xlu1 %60  ;;  %v90_v25 = vpop.permute.xlu0 %89  ;;  %v133_v30 = vsel %vm132_vm2, %v86_v27, %v111_v23  ;;  %v477_v23 = vrot.slane %v26_v17, %v36_v4 }
  0x7f   :  { %v102_v26 = vsel %vm101_vm0, %v88_v21, %v90_v25  ;;  %v73_v29 = vsel %vm72_vm1, %v59_v20, %v61_v24  ;;  %v141_v38 = vsel %vm140_vm3, %v133_v30, %v1084_v5 }
  0x80   :  { %v112_v28 = vrot.slane %v102_v26, 7 }
  0x82   :  { %v94_v31 = vpop.permute.xlu1 %93  ;;  %v92_v32 = vpop.permute.xlu0 %91  ;;  %v134_v33 = vsel %vm132_vm2, %v73_v29, %v112_v28 }
  0x83   :  { %v103_v34 = vsel %vm101_vm0, %v90_v25, %v92_v32  ;;  %v104_v35 = vsel %vm101_vm0, %v92_v32, %v94_v31  ;;  %v142_v36 = vsel %vm140_vm3, %v134_v33, %v37_v7 }
  0x84   :  { %938 = vmatprep.subr.msk.mxu0 %vm157_vm4, %v142_v36  ;;  %v113_v39 = vrot.slane %v103_v34, 7  ;;  %v114_v40 = vrot.slane %v104_v35, 7  ;;  %v485_v34 = vrot.slane %v26_v17, %v44_v8  ;;  %v489_v8 = vrot.slane %v26_v17, %v48_v13 }
  0x85   :  { %939 = vmatpush1.msk.msra.mxu0 %vm157_vm4, %v141_v38  ;;  %v497_v13 = vrot.slane %v26_v17, %v56_v16 }
  0x86   :  { %v65_v41 = vpop.permute.xlu1 %64  ;;  %940 = vmatmul.mubr.msk.f32.vlgmr.msra.gmra.mrb[0].mxu0 %vm153_vm5, %v27_v37  ;;  %v63_v42 = vpop.permute.xlu0 %62 }
  0x87   :  { %v74_v43 = vsel %vm72_vm1, %v61_v24, %v63_v42  ;;  %v75_v44 = vsel %vm72_vm1, %v63_v42, %v65_v41  ;;  %385 = vmatprep.mubr.f32.mxu0 %v1031_v6 }
  0x88   :  { %v136_v45 = vsel %vm132_vm2, %v75_v44, %v114_v40  ;;  %v135_v46 = vsel %vm132_vm2, %v74_v43, %v113_v39  ;;  %v493_v43 = vrot.slane %v26_v17, %v52_v12 }
  0x89   :  { %v144_v47 = vsel %vm140_vm3, %v136_v45, %v45_v10  ;;  %v143_v48 = vsel %vm140_vm3, %v135_v46, %v41_v11 }
  0x8a   :  { %v98_v49 = vpop.permute.xlu1 %97  ;;  %941 = vmatprep.subr.msk.mxu1 %vm157_vm4, %v144_v47  ;;  %v96_v50 = vpop.permute.xlu0 %95 }
  0x8b   :  { %v105_v51 = vsel %vm101_vm0, %v94_v31, %v96_v50  ;;  %v106_v52 = vsel %vm101_vm0, %v96_v50, %v98_v49  ;;  %942 = vmatpush1.msk.msra.mxu1 %vm157_vm4, %v143_v48  ;;  %v481_v31 = vrot.slane %v26_v17, %v40_v9 }
  0x8c   :  { %943 = vmatmul.mubr.msk.f32.vlgmr.msra.gmra.mrb[0].mxu1 %vm153_vm5, %v27_v37  ;;  %963 = vmatprep.subr.mxu1 %v1031_v6  ;;  %v115_v53 = vrot.slane %v105_v51, 7  ;;  %v116_v54 = vrot.slane %v106_v52, 7 }
  0x8d   :  { %965 = vmatprep.mubr.msk.f32.mxu1 %vm1035_vm6, %v1031_v6 }
  0x8e   :  { %v69_v55 = vpop.permute.xlu1 %68  ;;  %v67_v56 = vpop.permute.xlu0 %66 }
  0x8f   :  { %v76_v57 = vsel %vm72_vm1, %v65_v41, %v67_v56  ;;  %v77_v58 = vsel %vm72_vm1, %v67_v56, %v69_v55 }
  0x90   :  { %v137_v59 = vsel %vm132_vm2, %v76_v57, %v115_v53  ;;  %v138_v60 = vsel %vm132_vm2, %v77_v58, %v116_v54 }
  0x91   :  { %v146_v61 = vsel %vm140_vm3, %v138_v60, %v1110_v14  ;;  %v145_v62 = vsel %vm140_vm3, %v137_v59, %v1114_v15  ;;  %v11_v15 = vstv %s1290_s5 }
  0x92   :  { %v71_v63 = vpop.permute.xlu1 %70  ;;  %944 = vmatprep.subr.msk.mxu0 %vm157_vm4, %v146_v61  ;;  %v100_v2 = vpop.permute.xlu0 %99  ;;  %12 = vst [vmem:[#allocation2] sm:$0x1] %v11_v15 }
  0x93   :  { %v107_v5 = vsel %vm101_vm0, %v98_v49, %v100_v2  ;;  %945 = vmatpush1.msk.msra.mxu0 %vm157_vm4, %v145_v62  ;;  %v78_v10 = vsel %vm72_vm1, %v69_v55, %v71_v63 }
  0x94   :  { %v117_v7 = vrot.slane %v107_v5, 7  ;;  %946 = vmatmul.mubr.msk.f32.vlgmr.msra.gmra.mrb[2].mxu0 %vm153_vm5, %v27_v37 }
  0x95   :  { %654 = vmatprep.mubr.f32.mxu0 %v1031_v6 }
  0x96   :  { %v139_v11 = vsel %vm132_vm2, %v78_v10, %v117_v7 }
  0x97   :  { %v147_v14 = vsel %vm140_vm3, %v139_v11, %v1127_v18  ;;  %v473_v18 = vrot.slane %v26_v17, %v1080_v3 }
  0x98   :  { %964 = vmatpush3.msk.msra.mxu1 %vm157_vm4, %v147_v14 }
  0x99   :  { %966 = vmatmul.mubr.msk.f32.vlgmr.msra.gmra.mrb[2].mxu1 %vm153_vm5, %v27_v37  ;;  %v513_v53 = vld [vmem:[#allocation2] sm:$0x1] }
  0x9a   :  { %725 = vmatprep.mubr.f32.mxu1 %v1031_v6 }
  0xa3   :  { %v151_v19 = vpop.permute.xlu0 %150 }
 0x159   :  { %v245_v20 = vpop.f32.mrb[0].mxu0 }
 0x15a   :  { %v247_v21 = vpop.f32.mrb[1].mxu0  ;;  %v246_v22 = vadd.f32 %v245_v20, %v151_v19 }
 0x15b   :  { %v248_v24 = vadd.f32 %v247_v21, %v151_v19 }
 0x15c   :  { %v462_v25 = vmax.f32 %v246_v22, 0.0 }
 0x15d   :  { %v463_v26 = vmax.f32 %v248_v24, 0.0 }
 0x15e   :  { %v1197_v27 = vmul.f32 %v473_v18, %v462_v25 }
 0x15f   :  { %v316_v28 = vpop.f32.mrb[0].mxu1  ;;  %v1199_v29 = vmul.f32 %v477_v23, %v463_v26  ;;  %v512_v23 = vld [vmem:[%s1292_s3] sm:$0x1] }
 0x160   :  { %v317_v30 = vadd.f32 %v316_v28, %v151_v19  ;;  %v318_v32 = vpop.f32.mrb[1].mxu1 }
 0x161   :  { %v319_v33 = vadd.f32 %v318_v32, %v151_v19  ;;  %v1001_v4 = vpack.i.bf16 %v1199_v29, %v1197_v27 }
 0x162   :  { %v464_v35 = vmax.f32 %v317_v30, 0.0 }
 0x163   :  { %v465_v36 = vmax.f32 %v319_v33, 0.0  ;;  %1002 = vrot.lane.b32.xlu1 %v1001_v4, %s1032_s23 }
 0x164   :  { %v1208_v37 = vmul.f32 %v481_v31, %v464_v35 }
 0x165   :  { %v1210_v38 = vmul.f32 %v485_v34, %v465_v36 }
 0x167   :  { %v387_v39 = vpop.f32.mrb[2].mxu0  ;;  %1007 = vrot.lane.b32.xlu1 %v1001_v4, %s1033_s24  ;;  %v1011_v9 = vpack.i.bf16 %v1210_v38, %v1208_v37 }
 0x168   :  { %v388_v40 = vadd.f32 %v387_v39, %v151_v19  ;;  %v389_v41 = vpop.f32.mrb[3].mxu0 }
 0x169   :  { %v390_v42 = vadd.f32 %v389_v41, %v151_v19  ;;  %1012 = vrot.lane.b32.xlu0 %v1011_v9, %s1032_s23 }
 0x16a   :  { %v466_v44 = vmax.f32 %v388_v40, 0.0  ;;  %v1036_v40 = vmov 0.0|0.0  }
 0x16b   :  { %v467_v45 = vmax.f32 %v390_v42, 0.0  ;;  %1017 = vrot.lane.b32.xlu1 %v1011_v9, %s1033_s24 }
 0x16c   :  { %v1221_v46 = vmul.f32 %v489_v8, %v466_v44  ;;  %v458_v47 = vpop.f32.mrb[2].mxu1  ;;  %v1037_v8 = vmov 1966171168  }
 0x16d   :  { %v1223_v48 = vmul.f32 %v493_v43, %v467_v45  ;;  %v459_v49 = vadd.f32 %v458_v47, %v151_v19  ;;  %v967_v50 = vpop.f32.mrb[3].mxu1  ;;  %v884_v41 = vunpack.c.l.s4 %v1037_v8 }
 0x16f   :  { %v468_v51 = vmax.f32 %v459_v49, 0.0  ;;  %v1021_v12 = vpack.i.bf16 %v1223_v48, %v1221_v46 }
 0x171   :  { %1022 = vrot.lane.b32.xlu0 %v1021_v12, %s1032_s23  ;;  %1027 = vrot.lane.b32.xlu1 %v1021_v12, %s1033_s24  ;;  %v1231_v52 = vmul.f32 %v497_v13, %v468_v51 }
 0x175   :  { %533 = vrot.lane.b32.xlu0 %v1231_v52, %s1032_s23  ;;  %561 = vrot.lane.b32.xlu1 %v1231_v52, %s1033_s24 }
 0x179   :  { %579 = vperm.xlu0 %1000, %v513_v53  }
 0x1d5   :  { %v1003_v54 = vpop.permute.xlu1 %1002 }
 0x1d6   :  { %v1005_v55 = vunpack.i.h.bf16 %v1003_v54  ;;  %v1004_v16 = vunpack.i.l.bf16 %v1003_v54 }
 0x1d8   :  { %v535_v2 = vsel %vm72_vm1, %v1004_v16, %v1005_v55 }
 0x1d9   :  { %v1008_v56 = vpop.permute.xlu1 %1007 }
 0x1da   :  { %v1010_v58 = vunpack.i.h.bf16 %v1008_v56  ;;  %v1009_v59 = vunpack.i.l.bf16 %v1008_v56 }
 0x1db   :  { %v1013_v61 = vpop.permute.xlu0 %1012 }
 0x1dc   :  { %v1015_v62 = vunpack.i.h.bf16 %v1013_v61  ;;  %v1014_v63 = vunpack.i.l.bf16 %v1013_v61  ;;  %v563_v5 = vsel %vm101_vm0, %v1009_v59, %v1010_v58  ;;  %v979_v11 = vpack.c.bf16 %v1009_v59, %v1004_v16 }
 0x1dd   :  { %v1018_v7 = vpop.permute.xlu1 %1017  ;;  %v977_v10 = vpack.c.bf16 %v563_v5, %v535_v2 }
 0x1de   :  { %v1020_v14 = vunpack.i.h.bf16 %v1018_v7  ;;  %v1019_v15 = vunpack.i.l.bf16 %v1018_v7  ;;  %v536_v17 = vsel %vm72_vm1, %v1005_v55, %v1014_v63  ;;  %v537_v20 = vsel %vm72_vm1, %v1014_v63, %v1015_v62 }
 0x1df   :  { %978 = vmatprep.subr.bf16.mxu0 %v977_v10 }
 0x1e0   :  { %v564_v19 = vsel %vm101_vm0, %v1010_v58, %v1019_v15  ;;  %981 = vmatpush1.bf16.msk.msra.mxu0 %vm980_vm9, %v979_v11  ;;  %v565_v21 = vsel %vm101_vm0, %v1019_v15, %v1020_v14 }
 0x1e1   :  { %v984_v22 = vpack.c.bf16 %v564_v19, %v536_v17  ;;  %594 = vmatprep.subr.mxu0 %v1199_v29  ;;  %v982_v18 = vpack.c.bf16 %v565_v21, %v537_v20 }
 0x1e3   :  { %v1023_v24 = vpop.permute.xlu0 %1022  ;;  %v1028_v25 = vpop.permute.xlu1 %1027  ;;  %983 = vmatprep.subr.bf16.mxu1 %v982_v18 }
 0x1e4   :  { %v1025_v26 = vunpack.i.h.bf16 %v1023_v24  ;;  %v1024_v28 = vunpack.i.l.bf16 %v1023_v24  ;;  %v1030_v30 = vunpack.i.h.bf16 %v1028_v25  ;;  %v1029_v31 = vunpack.i.l.bf16 %v1028_v25  ;;  %595 = vmatpush1.msra.mxu0 %v1197_v27  ;;  %985 = vmatpush1.bf16.msra.mxu1 %v984_v22 }
 0x1e5   :  { %953 = vmatmul.mubr.msk.f32.vlgmr.msra.gmra.mrb[4].mxu0 %vm586_vm10, %v512_v23  ;;  %665 = vmatprep.subr.mxu1 %v1210_v38 }
 0x1e6   :  { %v538_v29 = vsel %vm72_vm1, %v1015_v62, %v1024_v28  ;;  %v566_v32 = vsel %vm101_vm0, %v1020_v14, %v1029_v31  ;;  %v539_v33 = vsel %vm72_vm1, %v1024_v28, %v1025_v26  ;;  %v567_v34 = vsel %vm101_vm0, %v1029_v31, %v1030_v30  ;;  %796 = vmatprep.mubr.f32.mxu0 %v1031_v6 }
 0x1e7   :  { %v988_v4 = vpack.c.bf16 %v566_v32, %v538_v29  ;;  %v534_v35 = vpop.permute.xlu0 %533  ;;  %v562_v36 = vpop.permute.xlu1 %561  ;;  %v986_v39 = vpack.c.bf16 %v567_v34, %v539_v33 }
 0x1e8   :  { %v540_v27 = vsel %vm72_vm1, %v1025_v26, %v534_v35  ;;  %v568_v9 = vsel %vm101_vm0, %v1030_v30, %v562_v36  ;;  %666 = vmatpush1.msra.mxu1 %v1208_v37 }
 0x1e9   :  { %v991_v38 = vpack.c.bf16 %v568_v9, %v540_v27  ;;  %954 = vmatmul.mubr.msk.f32.vlgmr.msra.gmra.mrb[4].mxu1 %vm586_vm10, %v512_v23  ;;  %987 = vmatprep.subr.bf16.mxu0 %v986_v39 }
 0x1ea   :  { %989 = vmatpush1.bf16.msra.mxu0 %v988_v4  ;;  %990 = vmatprep.subr.bf16.mxu1 %v1036_v40 }
 0x1eb   :  { %736 = vmatprep.subr.mxu0 %v1223_v48  ;;  %992 = vmatpush3.bf16.msra.mxu1 %v991_v38  ;;  %v885_v48 = vunpack.c.0.s8 %v884_v41 }
 0x1ec   :  { %972 = vmatprep.subr.mxu1 %v1031_v6  ;;  %974 = vmatprep.mubr.msk.f32.mxu1 %vm1035_vm6, %v1031_v6 }
 0x1ed   :  { %v888_v51 = vsub.s32 %v885_v48, %v1074_v1 }
 0x1ee   :  { %737 = vmatpush1.msra.mxu0 %v1221_v46 }
 0x1ef   :  { %955 = vmatmul.mubr.msk.f32.vlgmr.msra.gmra.mrb[6].mxu0 %vm586_vm10, %v512_v23  ;;  %973 = vmatpush3.msra.mxu1 %v1231_v52 }
 0x1f0   :  { %975 = vmatmul.mubr.msk.f32.vlgmr.msra.gmra.mrb[6].mxu1 %vm586_vm10, %v512_v23 }
 0x1f8   :  { %v580_v37 = vpop.permute.xlu0 %579 }
 0x1f9   :  { %v585_v42 = vrot.slane %v580_v37, %v1080_v3 }
 0x2b8   :  { %v656_v43 = vpop.f32.mrb[4].mxu0 }
 0x2b9   :  { %v657_v44 = vadd.f32 %v656_v43, %v585_v42  ;;  %v658_v45 = vpop.f32.mrb[5].mxu0 }
 0x2ba   :  { %v659_v47 = vadd.f32 %v658_v45, %v585_v42 }
 0x2bc   :  { %v880_v49 = vcombine.low %v657_v44, %v659_v47  ;;  %v727_v6 = vpop.f32.mrb[4].mxu1 }
 0x2bd   :  { %v728_v50 = vadd.f32 %v727_v6, %v585_v42  ;;  %v729_v46 = vpop.f32.mrb[5].mxu1 }
 0x2be   :  { %v730_v13 = vadd.f32 %v729_v46, %v585_v42  ;;  %v889_v52 = vrot.slane %v880_v49, %v888_v51 }
 0x2c0   :  { %v881_v12 = vcombine.low %v728_v50, %v730_v13 }
 0x2c2   :  { %v896_v53 = vrot.slane %v881_v12, %v888_v51  ;;  %v798_v54 = vpop.f32.mrb[6].mxu0 }
 0x2c3   :  { %v799_v55 = vadd.f32 %v798_v54, %v585_v42  ;;  %v800_v16 = vpop.f32.mrb[7].mxu0  ;;  %v869_v56 = vpop.f32.mrb[6].mxu1 }
 0x2c4   :  { %v911_v3 = vcombine.low %v889_v52, %v896_v53  ;;  %v801_v57 = vadd.f32 %v800_v16, %v585_v42  ;;  %v870_v58 = vadd.f32 %v869_v56, %v585_v42  ;;  %v976_v59 = vpop.f32.mrb[7].mxu1 }
 0x2c6   :  { %v882_v60 = vcombine.low %v799_v55, %v801_v57  ;;  %v910_v62 = vrot.slane %v870_v58, %v888_v51  ;;  %v919_v2 = vrot.slane %v911_v3, %v888_v51 }
 0x2c8   :  { %v903_v61 = vrot.slane %v882_v60, %v888_v51 }
 0x2ca   :  { %v912_v63 = vcombine.low %v903_v61, %v910_v62 }
 0x2cc   :  { %v926_v5 = vrot.slane %v912_v63, %v888_v51 }
 0x2ce   :  { %v927_v1 = vcombine.low %v919_v2, %v926_v5 }
 0x2d0   :  { %933 = vst.msk [vmem:[%s1293_s6] sm:$0x7f] %vm931_vm11, %v927_v1 }

</bundles_post_ra>
